<compile_context>
chip_gen: v6e
topology: v6e:2x2x1
jax: 0.10.0
libtpu: 0.0.40
codegen_flags: <defaults>
</compile_context>

<pallas_src>
import functools

import jax
import jax.numpy as jnp
from jax import lax
from jax.experimental import pallas as pl
from jax.experimental.pallas import tpu as pltpu


def gnconv_kernel(x_ref, w_in_ref, b_in_ref, mw_ref, b_dw_ref,
                  w_out_ref, b_out_ref, o_ref, *, dim, num_taps, shifts):
    """One group of images per grid step.

    In-kernel shapes (channels on sublanes, L = images_per_step * H*W lanes):
      x    : [C_in, L]
      proj : [2*dim, L] = W_in @ x + b_in      (fused conv_in, one MXU push)
      pwa  : proj[:dim], abc : proj[dim:]      (sublane split, free if dim%8==0)
      dw   : [dim, L]   = sum_tap roll(abc, shifts[tap]) * mw[tap]  + b_dw
      out  : [dim, L]   = W_out @ (pwa * dw) + b_out
    """
    x = x_ref[0]                                              # [C_in, L]

    # ---- conv_in: single fused matmul, f32 accumulation on the MXU ----
    proj = jnp.dot(w_in_ref[...], x,
                   preferred_element_type=jnp.float32) + b_in_ref[...]
    pwa = proj[:dim]                                          # [dim, L]
    abc = proj[dim:]                                          # [dim, L]

    # ---- depthwise KxK conv: lane roll (XLU) + one MAC per tap (VPU).
    #      mw already folds scale, the per-channel tap weight and the
    #      zero-padding / cross-image validity mask.  f32 throughout
    #      (v5e-friendly), 49-tap sum accumulated in f32. ----
    acc = jnp.zeros_like(abc)
    for tap in range(num_taps):
        s = shifts[tap]
        rolled = abc if s == 0 else pltpu.roll(abc, shift=s, axis=1)
        acc = acc + rolled * mw_ref[tap]
    dw = acc + b_dw_ref[...]

    # ---- gate + conv_out (1x1 conv == matmul, lane-dense output store) ----
    gated = (pwa * dw).astype(w_out_ref.dtype)
    out = jnp.dot(w_out_ref[...], gated,
                  preferred_element_type=jnp.float32) + b_out_ref[...]
    o_ref[0] = out.astype(o_ref.dtype)


def gnconv_pallas(x_nchw, params, *, dim, K, scale=1.0,
                  mxu_dtype=jnp.float32, target_lanes=2048):
    B, C_in, H, W = x_nchw.shape
    HW = H * W
    P = K // 2

    # ---- fold images onto the lane axis until ~target_lanes per step ----
    g = max(1, min(B, max(1, target_lanes // HW)))
    while B % g:
        g -= 1
    num_groups = B // g
    L = g * HW
    # TODO(synk): on v7x (2 TensorCores) prefer >=2 parallel grid steps when
    # the batch allows; at the benchmark size a single fat step wins everywhere.

    # One wrapper transpose so lane index = (image_in_group)*HW + flat_pos.
    x_flat = (x_nchw.reshape(num_groups, g, C_in, HW)
              .transpose(0, 2, 1, 3)
              .reshape(num_groups, C_in, L)).astype(mxu_dtype)

    # ---- weight prep: PyTorch conv conventions -> kernel layouts ----
    w_in = params["w_conv_in"][:, :, 0, 0].astype(mxu_dtype)        # [2*dim, C_in]
    b_in = params["b_conv_in"].astype(jnp.float32)[:, None]         # [2*dim, 1]
    w_out = params["w_conv_out"][:, :, 0, 0].astype(mxu_dtype)      # [dim, dim]
    b_out = params["b_conv_out"].astype(jnp.float32)[:, None]       # [dim, 1]
    b_dw = params["b_dw"].astype(jnp.float32)[:, None] * scale      # [dim, 1]

    # ---- precomputed masked per-tap depthwise weights + static roll shifts.
    #      mw[tap] = (tap weight * scale)  (per channel, sublanes)
    #                x validity mask       (per lane; zero-padding AND
    #                                       cross-image wraparound).
    #      VMEM cost: K*K*dim*L*4 B (~0.8 MB at the test size).
    # TODO(synk): for production dim*HW, add an HW/row grid axis with explicit
    # K//2-row halos instead of one full-image lane block (roll can't cross a
    # lane-tile boundary), and size tiles per-generation VMEM.
    w_dw = params["w_dw"][:, 0].astype(jnp.float32) * scale         # [dim, K, K]
    pos = jnp.arange(HW, dtype=jnp.int32)
    ys, xs = pos // W, pos % W
    mw_taps, shifts = [], []
    for dy in range(K):
        for dx in range(K):
            sy, sx = dy - P, dx - P
            valid = ((ys + sy >= 0) & (ys + sy < H) &
                     (xs + sx >= 0) & (xs + sx < W)).astype(jnp.float32)
            mask_l = jnp.tile(valid, g)                              # [L]
            mw_taps.append(w_dw[:, dy, dx][:, None] * mask_l[None, :])
            shifts.append(int((-(sy * W + sx)) % L))
    mw_arr = jnp.stack(mw_taps)                                      # [K*K, dim, L]

    kernel = functools.partial(gnconv_kernel, dim=dim, num_taps=K * K,
                               shifts=tuple(shifts))

    const2 = lambda k: (0, 0)
    const3 = lambda k: (0, 0, 0)

    out_flat = pl.pallas_call(
        kernel,
        out_shape=jax.ShapeDtypeStruct((num_groups, dim, L), jnp.float32),
        grid_spec=pltpu.PrefetchScalarGridSpec(
            num_scalar_prefetch=0,
            grid=(num_groups,),
            in_specs=[
                pl.BlockSpec((1, C_in, L), lambda k: (k, 0, 0)),     # x
                pl.BlockSpec((2 * dim, C_in), const2),               # w_in (fused)
                pl.BlockSpec((2 * dim, 1), const2),                  # b_in (fused)
                pl.BlockSpec((K * K, dim, L), const3),               # masked taps
                pl.BlockSpec((dim, 1), const2),                      # b_dw
                pl.BlockSpec((dim, dim), const2),                    # w_out
                pl.BlockSpec((dim, 1), const2),                      # b_out
            ],
            out_specs=pl.BlockSpec((1, dim, L), lambda k: (k, 0, 0)),
        ),
        compiler_params=pltpu.CompilerParams(
            dimension_semantics=("parallel",),
            vmem_limit_bytes=48 * 1024 * 1024),   # < v7x 64 MiB physical
    )(x_flat, w_in, b_in, mw_arr, b_dw, w_out, b_out)

    # Undo the image-grouping transpose; output stays NCHW f32.
    return (out_flat.reshape(num_groups, dim, g, HW)
            .transpose(0, 2, 1, 3)
            .reshape(B, dim, H, W))


def gnconv_reference(x, params, *, dim, K, scale=1.0):
    """Pure-JAX reference mirroring the PyTorch forward (NCHW)."""
    dn = ("NCHW", "OIHW", "NCHW")
    proj = lax.conv_general_dilated(
        x, params["w_conv_in"], (1, 1), "VALID", dimension_numbers=dn
    ) + params["b_conv_in"][None, :, None, None]
    pwa, abc = proj[:, :dim], proj[:, dim:]
    pad = K // 2
    dw = lax.conv_general_dilated(
        abc, params["w_dw"], (1, 1), ((pad, pad), (pad, pad)),
        dimension_numbers=dn, feature_group_count=dim,
    ) + params["b_dw"][None, :, None, None]
    dw = dw * scale
    g = pwa * dw
    out = lax.conv_general_dilated(
        g, params["w_conv_out"], (1, 1), "VALID", dimension_numbers=dn
    ) + params["b_conv_out"][None, :, None, None]
    return out


if __name__ == "__main__":
    B, C_in, H, W = 2, 4, 16, 16
    dim, K = 8, 7
    scale = 1.0

    key = jax.random.PRNGKey(0)
    ks = jax.random.split(key, 7)
    # Deterministic synthetic parameters, PyTorch weight-shape convention.
    params = {
        "w_conv_in":  jax.random.normal(ks[0], (2 * dim, C_in, 1, 1), jnp.float32) * 0.1,
        "b_conv_in":  jax.random.normal(ks[1], (2 * dim,), jnp.float32) * 0.1,
        "w_dw":       jax.random.normal(ks[2], (dim, 1, K, K), jnp.float32) * 0.1,
        "b_dw":       jax.random.normal(ks[3], (dim,), jnp.float32) * 0.1,
        "w_conv_out": jax.random.normal(ks[4], (dim, dim, 1, 1), jnp.float32) * 0.1,
        "b_conv_out": jax.random.normal(ks[5], (dim,), jnp.float32) * 0.1,
    }
    x = jax.random.normal(ks[6], (B, C_in, H, W), jnp.float32)

    ref = gnconv_reference(x, params, dim=dim, K=K, scale=scale)

    # f32 MXU operands: tight check against the PyTorch-equivalent reference.
    out_f32 = jax.block_until_ready(
        gnconv_pallas(x, params, dim=dim, K=K, scale=scale,
                      mxu_dtype=jnp.float32))
    assert out_f32.shape == (B, dim, H, W), out_f32.shape
    assert jnp.allclose(out_f32, ref, rtol=1e-4, atol=1e-4), (
        float(jnp.max(jnp.abs(out_f32 - ref))))

    # bf16 MXU operands (v6e/v7x production path), f32 accumulation; looser
    # tolerance only reflects bf16 rounding of the matmul operands.
    out_bf16 = jax.block_until_ready(
        gnconv_pallas(x, params, dim=dim, K=K, scale=scale,
                      mxu_dtype=jnp.bfloat16))
    assert jnp.allclose(out_bf16, ref, rtol=5e-2, atol=5e-2), (
        float(jnp.max(jnp.abs(out_bf16 - ref))))

    print("KERNEL_OK")
</pallas_src>

<mosaic_0001>
module attributes {stable_mosaic.version = 11 : i64} {
  func.func @gnconv_kernel(%arg0: i32, %arg1: memref<1x4x512xf32, #tpu.memory_space<vmem>>, %arg2: memref<16x4xf32, #tpu.memory_space<vmem>>, %arg3: memref<16x1xf32, #tpu.memory_space<vmem>>, %arg4: memref<49x8x512xf32, #tpu.memory_space<vmem>>, %arg5: memref<8x1xf32, #tpu.memory_space<vmem>>, %arg6: memref<8x8xf32, #tpu.memory_space<vmem>>, %arg7: memref<8x1xf32, #tpu.memory_space<vmem>>, %arg8: memref<1x8x512xf32, #tpu.memory_space<vmem>>) attributes {dimension_semantics = [#tpu.dimension_semantics<parallel>], iteration_bounds = array<i64: 1>, scalar_prefetch = 0 : i64, scratch_operands = 0 : i64, tpu.core_type = #tpu.core_type<tc>, window_params = [{transform_indices = @transform_0, window_bounds = array<i64: 1, 4, 512>}, {pipeline_mode = #tpu.pipeline_mode<synchronous>, transform_indices = @transform_1, window_bounds = array<i64: 16, 4>}, {pipeline_mode = #tpu.pipeline_mode<synchronous>, transform_indices = @transform_2, window_bounds = array<i64: 16, 1>}, {pipeline_mode = #tpu.pipeline_mode<synchronous>, transform_indices = @transform_3, window_bounds = array<i64: 49, 8, 512>}, {pipeline_mode = #tpu.pipeline_mode<synchronous>, transform_indices = @transform_4, window_bounds = array<i64: 8, 1>}, {pipeline_mode = #tpu.pipeline_mode<synchronous>, transform_indices = @transform_5, window_bounds = array<i64: 8, 8>}, {pipeline_mode = #tpu.pipeline_mode<synchronous>, transform_indices = @transform_6, window_bounds = array<i64: 8, 1>}, {transform_indices = @transform_7, window_bounds = array<i64: 1, 8, 512>}]} {
    %c0 = arith.constant 0 : index
    %c0_0 = arith.constant 0 : index
    %c0_1 = arith.constant 0 : index
    %0 = vector.load %arg1[%c0, %c0_0, %c0_1] : memref<1x4x512xf32, #tpu.memory_space<vmem>>, vector<1x4x512xf32>
    %1 = vector.shape_cast %0 : vector<1x4x512xf32> to vector<4x512xf32>
    %c0_2 = arith.constant 0 : index
    %c0_3 = arith.constant 0 : index
    %2 = vector.load %arg2[%c0_2, %c0_3] : memref<16x4xf32, #tpu.memory_space<vmem>>, vector<16x4xf32>
    %cst = arith.constant dense<0.000000e+00> : vector<16x512xf32>
    %3 = tpu.matmul %2, %1, %cst {dimension_numbers = #tpu.dot_dimension_numbers<[1], [0], [0], [1], [0, 0, 1, 1], [], []>} : vector<16x4xf32>, vector<4x512xf32>, vector<16x512xf32> -> vector<16x512xf32>
    %c0_4 = arith.constant 0 : index
    %c0_5 = arith.constant 0 : index
    %4 = vector.load %arg3[%c0_4, %c0_5] : memref<16x1xf32, #tpu.memory_space<vmem>>, vector<16x1xf32>
    %5 = vector.broadcast %4 : vector<16x1xf32> to vector<16x512xf32>
    %6 = arith.addf %3, %5 : vector<16x512xf32>
    %7 = vector.extract_strided_slice %6 {offsets = [0, 0], sizes = [8, 512], strides = [1, 1]} : vector<16x512xf32> to vector<8x512xf32>
    %8 = vector.extract_strided_slice %6 {offsets = [8, 0], sizes = [8, 512], strides = [1, 1]} : vector<16x512xf32> to vector<8x512xf32>
    %cst_6 = arith.constant 0.000000e+00 : f32
    %9 = vector.broadcast %cst_6 : f32 to vector<8x512xf32>
    %c51_i32 = arith.constant 51 : i32
    %10 = tpu.dynamic_rotate %8 by %c51_i32 dim 1 : vector<8x512xf32>, i32 -> vector<8x512xf32>
    %c0_7 = arith.constant 0 : index
    %c0_8 = arith.constant 0 : index
    %c0_9 = arith.constant 0 : index
    %11 = vector.load %arg4[%c0_7, %c0_8, %c0_9] : memref<49x8x512xf32, #tpu.memory_space<vmem>>, vector<1x8x512xf32>
    %12 = vector.shape_cast %11 : vector<1x8x512xf32> to vector<8x512xf32>
    %13 = arith.mulf %10, %12 : vector<8x512xf32>
    %14 = arith.addf %9, %13 : vector<8x512xf32>
    %c50_i32 = arith.constant 50 : i32
    %15 = tpu.dynamic_rotate %8 by %c50_i32 dim 1 : vector<8x512xf32>, i32 -> vector<8x512xf32>
    %c1 = arith.constant 1 : index
    %c0_10 = arith.constant 0 : index
    %c0_11 = arith.constant 0 : index
    %16 = vector.load %arg4[%c1, %c0_10, %c0_11] : memref<49x8x512xf32, #tpu.memory_space<vmem>>, vector<1x8x512xf32>
    %17 = vector.shape_cast %16 : vector<1x8x512xf32> to vector<8x512xf32>
    %18 = arith.mulf %15, %17 : vector<8x512xf32>
    %19 = arith.addf %14, %18 : vector<8x512xf32>
    %c49_i32 = arith.constant 49 : i32
    %20 = tpu.dynamic_rotate %8 by %c49_i32 dim 1 : vector<8x512xf32>, i32 -> vector<8x512xf32>
    %c2 = arith.constant 2 : index
    %c0_12 = arith.constant 0 : index
    %c0_13 = arith.constant 0 : index
    %21 = vector.load %arg4[%c2, %c0_12, %c0_13] : memref<49x8x512xf32, #tpu.memory_space<vmem>>, vector<1x8x512xf32>
    %22 = vector.shape_cast %21 : vector<1x8x512xf32> to vector<8x512xf32>
    %23 = arith.mulf %20, %22 : vector<8x512xf32>
    %24 = arith.addf %19, %23 : vector<8x512xf32>
    %c48_i32 = arith.constant 48 : i32
    %25 = tpu.dynamic_rotate %8 by %c48_i32 dim 1 : vector<8x512xf32>, i32 -> vector<8x512xf32>
    %c3 = arith.constant 3 : index
    %c0_14 = arith.constant 0 : index
    %c0_15 = arith.constant 0 : index
    %26 = vector.load %arg4[%c3, %c0_14, %c0_15] : memref<49x8x512xf32, #tpu.memory_space<vmem>>, vector<1x8x512xf32>
    %27 = vector.shape_cast %26 : vector<1x8x512xf32> to vector<8x512xf32>
    %28 = arith.mulf %25, %27 : vector<8x512xf32>
    %29 = arith.addf %24, %28 : vector<8x512xf32>
    %c47_i32 = arith.constant 47 : i32
    %30 = tpu.dynamic_rotate %8 by %c47_i32 dim 1 : vector<8x512xf32>, i32 -> vector<8x512xf32>
    %c4 = arith.constant 4 : index
    %c0_16 = arith.constant 0 : index
    %c0_17 = arith.constant 0 : index
    %31 = vector.load %arg4[%c4, %c0_16, %c0_17] : memref<49x8x512xf32, #tpu.memory_space<vmem>>, vector<1x8x512xf32>
    %32 = vector.shape_cast %31 : vector<1x8x512xf32> to vector<8x512xf32>
    %33 = arith.mulf %30, %32 : vector<8x512xf32>
    %34 = arith.addf %29, %33 : vector<8x512xf32>
    %c46_i32 = arith.constant 46 : i32
    %35 = tpu.dynamic_rotate %8 by %c46_i32 dim 1 : vector<8x512xf32>, i32 -> vector<8x512xf32>
    %c5 = arith.constant 5 : index
    %c0_18 = arith.constant 0 : index
    %c0_19 = arith.constant 0 : index
    %36 = vector.load %arg4[%c5, %c0_18, %c0_19] : memref<49x8x512xf32, #tpu.memory_space<vmem>>, vector<1x8x512xf32>
    %37 = vector.shape_cast %36 : vector<1x8x512xf32> to vector<8x512xf32>
    %38 = arith.mulf %35, %37 : vector<8x512xf32>
    %39 = arith.addf %34, %38 : vector<8x512xf32>
    %c45_i32 = arith.constant 45 : i32
    %40 = tpu.dynamic_rotate %8 by %c45_i32 dim 1 : vector<8x512xf32>, i32 -> vector<8x512xf32>
    %c6 = arith.constant 6 : index
    %c0_20 = arith.constant 0 : index
    %c0_21 = arith.constant 0 : index
    %41 = vector.load %arg4[%c6, %c0_20, %c0_21] : memref<49x8x512xf32, #tpu.memory_space<vmem>>, vector<1x8x512xf32>
    %42 = vector.shape_cast %41 : vector<1x8x512xf32> to vector<8x512xf32>
    %43 = arith.mulf %40, %42 : vector<8x512xf32>
    %44 = arith.addf %39, %43 : vector<8x512xf32>
    %c35_i32 = arith.constant 35 : i32
    %45 = tpu.dynamic_rotate %8 by %c35_i32 dim 1 : vector<8x512xf32>, i32 -> vector<8x512xf32>
    %c7 = arith.constant 7 : index
    %c0_22 = arith.constant 0 : index
    %c0_23 = arith.constant 0 : index
    %46 = vector.load %arg4[%c7, %c0_22, %c0_23] : memref<49x8x512xf32, #tpu.memory_space<vmem>>, vector<1x8x512xf32>
    %47 = vector.shape_cast %46 : vector<1x8x512xf32> to vector<8x512xf32>
    %48 = arith.mulf %45, %47 : vector<8x512xf32>
    %49 = arith.addf %44, %48 : vector<8x512xf32>
    %c34_i32 = arith.constant 34 : i32
    %50 = tpu.dynamic_rotate %8 by %c34_i32 dim 1 : vector<8x512xf32>, i32 -> vector<8x512xf32>
    %c8 = arith.constant 8 : index
    %c0_24 = arith.constant 0 : index
    %c0_25 = arith.constant 0 : index
    %51 = vector.load %arg4[%c8, %c0_24, %c0_25] : memref<49x8x512xf32, #tpu.memory_space<vmem>>, vector<1x8x512xf32>
    %52 = vector.shape_cast %51 : vector<1x8x512xf32> to vector<8x512xf32>
    %53 = arith.mulf %50, %52 : vector<8x512xf32>
    %54 = arith.addf %49, %53 : vector<8x512xf32>
    %c33_i32 = arith.constant 33 : i32
    %55 = tpu.dynamic_rotate %8 by %c33_i32 dim 1 : vector<8x512xf32>, i32 -> vector<8x512xf32>
    %c9 = arith.constant 9 : index
    %c0_26 = arith.constant 0 : index
    %c0_27 = arith.constant 0 : index
    %56 = vector.load %arg4[%c9, %c0_26, %c0_27] : memref<49x8x512xf32, #tpu.memory_space<vmem>>, vector<1x8x512xf32>
    %57 = vector.shape_cast %56 : vector<1x8x512xf32> to vector<8x512xf32>
    %58 = arith.mulf %55, %57 : vector<8x512xf32>
    %59 = arith.addf %54, %58 : vector<8x512xf32>
    %c32_i32 = arith.constant 32 : i32
    %60 = tpu.dynamic_rotate %8 by %c32_i32 dim 1 : vector<8x512xf32>, i32 -> vector<8x512xf32>
    %c10 = arith.constant 10 : index
    %c0_28 = arith.constant 0 : index
    %c0_29 = arith.constant 0 : index
    %61 = vector.load %arg4[%c10, %c0_28, %c0_29] : memref<49x8x512xf32, #tpu.memory_space<vmem>>, vector<1x8x512xf32>
    %62 = vector.shape_cast %61 : vector<1x8x512xf32> to vector<8x512xf32>
    %63 = arith.mulf %60, %62 : vector<8x512xf32>
    %64 = arith.addf %59, %63 : vector<8x512xf32>
    %c31_i32 = arith.constant 31 : i32
    %65 = tpu.dynamic_rotate %8 by %c31_i32 dim 1 : vector<8x512xf32>, i32 -> vector<8x512xf32>
    %c11 = arith.constant 11 : index
    %c0_30 = arith.constant 0 : index
    %c0_31 = arith.constant 0 : index
    %66 = vector.load %arg4[%c11, %c0_30, %c0_31] : memref<49x8x512xf32, #tpu.memory_space<vmem>>, vector<1x8x512xf32>
    %67 = vector.shape_cast %66 : vector<1x8x512xf32> to vector<8x512xf32>
    %68 = arith.mulf %65, %67 : vector<8x512xf32>
    %69 = arith.addf %64, %68 : vector<8x512xf32>
    %c30_i32 = arith.constant 30 : i32
    %70 = tpu.dynamic_rotate %8 by %c30_i32 dim 1 : vector<8x512xf32>, i32 -> vector<8x512xf32>
    %c12 = arith.constant 12 : index
    %c0_32 = arith.constant 0 : index
    %c0_33 = arith.constant 0 : index
    %71 = vector.load %arg4[%c12, %c0_32, %c0_33] : memref<49x8x512xf32, #tpu.memory_space<vmem>>, vector<1x8x512xf32>
    %72 = vector.shape_cast %71 : vector<1x8x512xf32> to vector<8x512xf32>
    %73 = arith.mulf %70, %72 : vector<8x512xf32>
    %74 = arith.addf %69, %73 : vector<8x512xf32>
    %c29_i32 = arith.constant 29 : i32
    %75 = tpu.dynamic_rotate %8 by %c29_i32 dim 1 : vector<8x512xf32>, i32 -> vector<8x512xf32>
    %c13 = arith.constant 13 : index
    %c0_34 = arith.constant 0 : index
    %c0_35 = arith.constant 0 : index
    %76 = vector.load %arg4[%c13, %c0_34, %c0_35] : memref<49x8x512xf32, #tpu.memory_space<vmem>>, vector<1x8x512xf32>
    %77 = vector.shape_cast %76 : vector<1x8x512xf32> to vector<8x512xf32>
    %78 = arith.mulf %75, %77 : vector<8x512xf32>
    %79 = arith.addf %74, %78 : vector<8x512xf32>
    %c19_i32 = arith.constant 19 : i32
    %80 = tpu.dynamic_rotate %8 by %c19_i32 dim 1 : vector<8x512xf32>, i32 -> vector<8x512xf32>
    %c14 = arith.constant 14 : index
    %c0_36 = arith.constant 0 : index
    %c0_37 = arith.constant 0 : index
    %81 = vector.load %arg4[%c14, %c0_36, %c0_37] : memref<49x8x512xf32, #tpu.memory_space<vmem>>, vector<1x8x512xf32>
    %82 = vector.shape_cast %81 : vector<1x8x512xf32> to vector<8x512xf32>
    %83 = arith.mulf %80, %82 : vector<8x512xf32>
    %84 = arith.addf %79, %83 : vector<8x512xf32>
    %c18_i32 = arith.constant 18 : i32
    %85 = tpu.dynamic_rotate %8 by %c18_i32 dim 1 : vector<8x512xf32>, i32 -> vector<8x512xf32>
    %c15 = arith.constant 15 : index
    %c0_38 = arith.constant 0 : index
    %c0_39 = arith.constant 0 : index
    %86 = vector.load %arg4[%c15, %c0_38, %c0_39] : memref<49x8x512xf32, #tpu.memory_space<vmem>>, vector<1x8x512xf32>
    %87 = vector.shape_cast %86 : vector<1x8x512xf32> to vector<8x512xf32>
    %88 = arith.mulf %85, %87 : vector<8x512xf32>
    %89 = arith.addf %84, %88 : vector<8x512xf32>
    %c17_i32 = arith.constant 17 : i32
    %90 = tpu.dynamic_rotate %8 by %c17_i32 dim 1 : vector<8x512xf32>, i32 -> vector<8x512xf32>
    %c16 = arith.constant 16 : index
    %c0_40 = arith.constant 0 : index
    %c0_41 = arith.constant 0 : index
    %91 = vector.load %arg4[%c16, %c0_40, %c0_41] : memref<49x8x512xf32, #tpu.memory_space<vmem>>, vector<1x8x512xf32>
    %92 = vector.shape_cast %91 : vector<1x8x512xf32> to vector<8x512xf32>
    %93 = arith.mulf %90, %92 : vector<8x512xf32>
    %94 = arith.addf %89, %93 : vector<8x512xf32>
    %c16_i32 = arith.constant 16 : i32
    %95 = tpu.dynamic_rotate %8 by %c16_i32 dim 1 : vector<8x512xf32>, i32 -> vector<8x512xf32>
    %c17 = arith.constant 17 : index
    %c0_42 = arith.constant 0 : index
    %c0_43 = arith.constant 0 : index
    %96 = vector.load %arg4[%c17, %c0_42, %c0_43] : memref<49x8x512xf32, #tpu.memory_space<vmem>>, vector<1x8x512xf32>
    %97 = vector.shape_cast %96 : vector<1x8x512xf32> to vector<8x512xf32>
    %98 = arith.mulf %95, %97 : vector<8x512xf32>
    %99 = arith.addf %94, %98 : vector<8x512xf32>
    %c15_i32 = arith.constant 15 : i32
    %100 = tpu.dynamic_rotate %8 by %c15_i32 dim 1 : vector<8x512xf32>, i32 -> vector<8x512xf32>
    %c18 = arith.constant 18 : index
    %c0_44 = arith.constant 0 : index
    %c0_45 = arith.constant 0 : index
    %101 = vector.load %arg4[%c18, %c0_44, %c0_45] : memref<49x8x512xf32, #tpu.memory_space<vmem>>, vector<1x8x512xf32>
    %102 = vector.shape_cast %101 : vector<1x8x512xf32> to vector<8x512xf32>
    %103 = arith.mulf %100, %102 : vector<8x512xf32>
    %104 = arith.addf %99, %103 : vector<8x512xf32>
    %c14_i32 = arith.constant 14 : i32
    %105 = tpu.dynamic_rotate %8 by %c14_i32 dim 1 : vector<8x512xf32>, i32 -> vector<8x512xf32>
    %c19 = arith.constant 19 : index
    %c0_46 = arith.constant 0 : index
    %c0_47 = arith.constant 0 : index
    %106 = vector.load %arg4[%c19, %c0_46, %c0_47] : memref<49x8x512xf32, #tpu.memory_space<vmem>>, vector<1x8x512xf32>
    %107 = vector.shape_cast %106 : vector<1x8x512xf32> to vector<8x512xf32>
    %108 = arith.mulf %105, %107 : vector<8x512xf32>
    %109 = arith.addf %104, %108 : vector<8x512xf32>
    %c13_i32 = arith.constant 13 : i32
    %110 = tpu.dynamic_rotate %8 by %c13_i32 dim 1 : vector<8x512xf32>, i32 -> vector<8x512xf32>
    %c20 = arith.constant 20 : index
    %c0_48 = arith.constant 0 : index
    %c0_49 = arith.constant 0 : index
    %111 = vector.load %arg4[%c20, %c0_48, %c0_49] : memref<49x8x512xf32, #tpu.memory_space<vmem>>, vector<1x8x512xf32>
    %112 = vector.shape_cast %111 : vector<1x8x512xf32> to vector<8x512xf32>
    %113 = arith.mulf %110, %112 : vector<8x512xf32>
    %114 = arith.addf %109, %113 : vector<8x512xf32>
    %c3_i32 = arith.constant 3 : i32
    %115 = tpu.dynamic_rotate %8 by %c3_i32 dim 1 : vector<8x512xf32>, i32 -> vector<8x512xf32>
    %c21 = arith.constant 21 : index
    %c0_50 = arith.constant 0 : index
    %c0_51 = arith.constant 0 : index
    %116 = vector.load %arg4[%c21, %c0_50, %c0_51] : memref<49x8x512xf32, #tpu.memory_space<vmem>>, vector<1x8x512xf32>
    %117 = vector.shape_cast %116 : vector<1x8x512xf32> to vector<8x512xf32>
    %118 = arith.mulf %115, %117 : vector<8x512xf32>
    %119 = arith.addf %114, %118 : vector<8x512xf32>
    %c2_i32 = arith.constant 2 : i32
    %120 = tpu.dynamic_rotate %8 by %c2_i32 dim 1 : vector<8x512xf32>, i32 -> vector<8x512xf32>
    %c22 = arith.constant 22 : index
    %c0_52 = arith.constant 0 : index
    %c0_53 = arith.constant 0 : index
    %121 = vector.load %arg4[%c22, %c0_52, %c0_53] : memref<49x8x512xf32, #tpu.memory_space<vmem>>, vector<1x8x512xf32>
    %122 = vector.shape_cast %121 : vector<1x8x512xf32> to vector<8x512xf32>
    %123 = arith.mulf %120, %122 : vector<8x512xf32>
    %124 = arith.addf %119, %123 : vector<8x512xf32>
    %c1_i32 = arith.constant 1 : i32
    %125 = tpu.dynamic_rotate %8 by %c1_i32 dim 1 : vector<8x512xf32>, i32 -> vector<8x512xf32>
    %c23 = arith.constant 23 : index
    %c0_54 = arith.constant 0 : index
    %c0_55 = arith.constant 0 : index
    %126 = vector.load %arg4[%c23, %c0_54, %c0_55] : memref<49x8x512xf32, #tpu.memory_space<vmem>>, vector<1x8x512xf32>
    %127 = vector.shape_cast %126 : vector<1x8x512xf32> to vector<8x512xf32>
    %128 = arith.mulf %125, %127 : vector<8x512xf32>
    %129 = arith.addf %124, %128 : vector<8x512xf32>
    %c24 = arith.constant 24 : index
    %c0_56 = arith.constant 0 : index
    %c0_57 = arith.constant 0 : index
    %130 = vector.load %arg4[%c24, %c0_56, %c0_57] : memref<49x8x512xf32, #tpu.memory_space<vmem>>, vector<1x8x512xf32>
    %131 = vector.shape_cast %130 : vector<1x8x512xf32> to vector<8x512xf32>
    %132 = arith.mulf %8, %131 : vector<8x512xf32>
    %133 = arith.addf %129, %132 : vector<8x512xf32>
    %c511_i32 = arith.constant 511 : i32
    %134 = tpu.dynamic_rotate %8 by %c511_i32 dim 1 : vector<8x512xf32>, i32 -> vector<8x512xf32>
    %c25 = arith.constant 25 : index
    %c0_58 = arith.constant 0 : index
    %c0_59 = arith.constant 0 : index
    %135 = vector.load %arg4[%c25, %c0_58, %c0_59] : memref<49x8x512xf32, #tpu.memory_space<vmem>>, vector<1x8x512xf32>
    %136 = vector.shape_cast %135 : vector<1x8x512xf32> to vector<8x512xf32>
    %137 = arith.mulf %134, %136 : vector<8x512xf32>
    %138 = arith.addf %133, %137 : vector<8x512xf32>
    %c510_i32 = arith.constant 510 : i32
    %139 = tpu.dynamic_rotate %8 by %c510_i32 dim 1 : vector<8x512xf32>, i32 -> vector<8x512xf32>
    %c26 = arith.constant 26 : index
    %c0_60 = arith.constant 0 : index
    %c0_61 = arith.constant 0 : index
    %140 = vector.load %arg4[%c26, %c0_60, %c0_61] : memref<49x8x512xf32, #tpu.memory_space<vmem>>, vector<1x8x512xf32>
    %141 = vector.shape_cast %140 : vector<1x8x512xf32> to vector<8x512xf32>
    %142 = arith.mulf %139, %141 : vector<8x512xf32>
    %143 = arith.addf %138, %142 : vector<8x512xf32>
    %c509_i32 = arith.constant 509 : i32
    %144 = tpu.dynamic_rotate %8 by %c509_i32 dim 1 : vector<8x512xf32>, i32 -> vector<8x512xf32>
    %c27 = arith.constant 27 : index
    %c0_62 = arith.constant 0 : index
    %c0_63 = arith.constant 0 : index
    %145 = vector.load %arg4[%c27, %c0_62, %c0_63] : memref<49x8x512xf32, #tpu.memory_space<vmem>>, vector<1x8x512xf32>
    %146 = vector.shape_cast %145 : vector<1x8x512xf32> to vector<8x512xf32>
    %147 = arith.mulf %144, %146 : vector<8x512xf32>
    %148 = arith.addf %143, %147 : vector<8x512xf32>
    %c499_i32 = arith.constant 499 : i32
    %149 = tpu.dynamic_rotate %8 by %c499_i32 dim 1 : vector<8x512xf32>, i32 -> vector<8x512xf32>
    %c28 = arith.constant 28 : index
    %c0_64 = arith.constant 0 : index
    %c0_65 = arith.constant 0 : index
    %150 = vector.load %arg4[%c28, %c0_64, %c0_65] : memref<49x8x512xf32, #tpu.memory_space<vmem>>, vector<1x8x512xf32>
    %151 = vector.shape_cast %150 : vector<1x8x512xf32> to vector<8x512xf32>
    %152 = arith.mulf %149, %151 : vector<8x512xf32>
    %153 = arith.addf %148, %152 : vector<8x512xf32>
    %c498_i32 = arith.constant 498 : i32
    %154 = tpu.dynamic_rotate %8 by %c498_i32 dim 1 : vector<8x512xf32>, i32 -> vector<8x512xf32>
    %c29 = arith.constant 29 : index
    %c0_66 = arith.constant 0 : index
    %c0_67 = arith.constant 0 : index
    %155 = vector.load %arg4[%c29, %c0_66, %c0_67] : memref<49x8x512xf32, #tpu.memory_space<vmem>>, vector<1x8x512xf32>
    %156 = vector.shape_cast %155 : vector<1x8x512xf32> to vector<8x512xf32>
    %157 = arith.mulf %154, %156 : vector<8x512xf32>
    %158 = arith.addf %153, %157 : vector<8x512xf32>
    %c497_i32 = arith.constant 497 : i32
    %159 = tpu.dynamic_rotate %8 by %c497_i32 dim 1 : vector<8x512xf32>, i32 -> vector<8x512xf32>
    %c30 = arith.constant 30 : index
    %c0_68 = arith.constant 0 : index
    %c0_69 = arith.constant 0 : index
    %160 = vector.load %arg4[%c30, %c0_68, %c0_69] : memref<49x8x512xf32, #tpu.memory_space<vmem>>, vector<1x8x512xf32>
    %161 = vector.shape_cast %160 : vector<1x8x512xf32> to vector<8x512xf32>
    %162 = arith.mulf %159, %161 : vector<8x512xf32>
    %163 = arith.addf %158, %162 : vector<8x512xf32>
    %c496_i32 = arith.constant 496 : i32
    %164 = tpu.dynamic_rotate %8 by %c496_i32 dim 1 : vector<8x512xf32>, i32 -> vector<8x512xf32>
    %c31 = arith.constant 31 : index
    %c0_70 = arith.constant 0 : index
    %c0_71 = arith.constant 0 : index
    %165 = vector.load %arg4[%c31, %c0_70, %c0_71] : memref<49x8x512xf32, #tpu.memory_space<vmem>>, vector<1x8x512xf32>
    %166 = vector.shape_cast %165 : vector<1x8x512xf32> to vector<8x512xf32>
    %167 = arith.mulf %164, %166 : vector<8x512xf32>
    %168 = arith.addf %163, %167 : vector<8x512xf32>
    %c495_i32 = arith.constant 495 : i32
    %169 = tpu.dynamic_rotate %8 by %c495_i32 dim 1 : vector<8x512xf32>, i32 -> vector<8x512xf32>
    %c32 = arith.constant 32 : index
    %c0_72 = arith.constant 0 : index
    %c0_73 = arith.constant 0 : index
    %170 = vector.load %arg4[%c32, %c0_72, %c0_73] : memref<49x8x512xf32, #tpu.memory_space<vmem>>, vector<1x8x512xf32>
    %171 = vector.shape_cast %170 : vector<1x8x512xf32> to vector<8x512xf32>
    %172 = arith.mulf %169, %171 : vector<8x512xf32>
    %173 = arith.addf %168, %172 : vector<8x512xf32>
    %c494_i32 = arith.constant 494 : i32
    %174 = tpu.dynamic_rotate %8 by %c494_i32 dim 1 : vector<8x512xf32>, i32 -> vector<8x512xf32>
    %c33 = arith.constant 33 : index
    %c0_74 = arith.constant 0 : index
    %c0_75 = arith.constant 0 : index
    %175 = vector.load %arg4[%c33, %c0_74, %c0_75] : memref<49x8x512xf32, #tpu.memory_space<vmem>>, vector<1x8x512xf32>
    %176 = vector.shape_cast %175 : vector<1x8x512xf32> to vector<8x512xf32>
    %177 = arith.mulf %174, %176 : vector<8x512xf32>
    %178 = arith.addf %173, %177 : vector<8x512xf32>
    %c493_i32 = arith.constant 493 : i32
    %179 = tpu.dynamic_rotate %8 by %c493_i32 dim 1 : vector<8x512xf32>, i32 -> vector<8x512xf32>
    %c34 = arith.constant 34 : index
    %c0_76 = arith.constant 0 : index
    %c0_77 = arith.constant 0 : index
    %180 = vector.load %arg4[%c34, %c0_76, %c0_77] : memref<49x8x512xf32, #tpu.memory_space<vmem>>, vector<1x8x512xf32>
    %181 = vector.shape_cast %180 : vector<1x8x512xf32> to vector<8x512xf32>
    %182 = arith.mulf %179, %181 : vector<8x512xf32>
    %183 = arith.addf %178, %182 : vector<8x512xf32>
    %c483_i32 = arith.constant 483 : i32
    %184 = tpu.dynamic_rotate %8 by %c483_i32 dim 1 : vector<8x512xf32>, i32 -> vector<8x512xf32>
    %c35 = arith.constant 35 : index
    %c0_78 = arith.constant 0 : index
    %c0_79 = arith.constant 0 : index
    %185 = vector.load %arg4[%c35, %c0_78, %c0_79] : memref<49x8x512xf32, #tpu.memory_space<vmem>>, vector<1x8x512xf32>
    %186 = vector.shape_cast %185 : vector<1x8x512xf32> to vector<8x512xf32>
    %187 = arith.mulf %184, %186 : vector<8x512xf32>
    %188 = arith.addf %183, %187 : vector<8x512xf32>
    %c482_i32 = arith.constant 482 : i32
    %189 = tpu.dynamic_rotate %8 by %c482_i32 dim 1 : vector<8x512xf32>, i32 -> vector<8x512xf32>
    %c36 = arith.constant 36 : index
    %c0_80 = arith.constant 0 : index
    %c0_81 = arith.constant 0 : index
    %190 = vector.load %arg4[%c36, %c0_80, %c0_81] : memref<49x8x512xf32, #tpu.memory_space<vmem>>, vector<1x8x512xf32>
    %191 = vector.shape_cast %190 : vector<1x8x512xf32> to vector<8x512xf32>
    %192 = arith.mulf %189, %191 : vector<8x512xf32>
    %193 = arith.addf %188, %192 : vector<8x512xf32>
    %c481_i32 = arith.constant 481 : i32
    %194 = tpu.dynamic_rotate %8 by %c481_i32 dim 1 : vector<8x512xf32>, i32 -> vector<8x512xf32>
    %c37 = arith.constant 37 : index
    %c0_82 = arith.constant 0 : index
    %c0_83 = arith.constant 0 : index
    %195 = vector.load %arg4[%c37, %c0_82, %c0_83] : memref<49x8x512xf32, #tpu.memory_space<vmem>>, vector<1x8x512xf32>
    %196 = vector.shape_cast %195 : vector<1x8x512xf32> to vector<8x512xf32>
    %197 = arith.mulf %194, %196 : vector<8x512xf32>
    %198 = arith.addf %193, %197 : vector<8x512xf32>
    %c480_i32 = arith.constant 480 : i32
    %199 = tpu.dynamic_rotate %8 by %c480_i32 dim 1 : vector<8x512xf32>, i32 -> vector<8x512xf32>
    %c38 = arith.constant 38 : index
    %c0_84 = arith.constant 0 : index
    %c0_85 = arith.constant 0 : index
    %200 = vector.load %arg4[%c38, %c0_84, %c0_85] : memref<49x8x512xf32, #tpu.memory_space<vmem>>, vector<1x8x512xf32>
    %201 = vector.shape_cast %200 : vector<1x8x512xf32> to vector<8x512xf32>
    %202 = arith.mulf %199, %201 : vector<8x512xf32>
    %203 = arith.addf %198, %202 : vector<8x512xf32>
    %c479_i32 = arith.constant 479 : i32
    %204 = tpu.dynamic_rotate %8 by %c479_i32 dim 1 : vector<8x512xf32>, i32 -> vector<8x512xf32>
    %c39 = arith.constant 39 : index
    %c0_86 = arith.constant 0 : index
    %c0_87 = arith.constant 0 : index
    %205 = vector.load %arg4[%c39, %c0_86, %c0_87] : memref<49x8x512xf32, #tpu.memory_space<vmem>>, vector<1x8x512xf32>
    %206 = vector.shape_cast %205 : vector<1x8x512xf32> to vector<8x512xf32>
    %207 = arith.mulf %204, %206 : vector<8x512xf32>
    %208 = arith.addf %203, %207 : vector<8x512xf32>
    %c478_i32 = arith.constant 478 : i32
    %209 = tpu.dynamic_rotate %8 by %c478_i32 dim 1 : vector<8x512xf32>, i32 -> vector<8x512xf32>
    %c40 = arith.constant 40 : index
    %c0_88 = arith.constant 0 : index
    %c0_89 = arith.constant 0 : index
    %210 = vector.load %arg4[%c40, %c0_88, %c0_89] : memref<49x8x512xf32, #tpu.memory_space<vmem>>, vector<1x8x512xf32>
    %211 = vector.shape_cast %210 : vector<1x8x512xf32> to vector<8x512xf32>
    %212 = arith.mulf %209, %211 : vector<8x512xf32>
    %213 = arith.addf %208, %212 : vector<8x512xf32>
    %c477_i32 = arith.constant 477 : i32
    %214 = tpu.dynamic_rotate %8 by %c477_i32 dim 1 : vector<8x512xf32>, i32 -> vector<8x512xf32>
    %c41 = arith.constant 41 : index
    %c0_90 = arith.constant 0 : index
    %c0_91 = arith.constant 0 : index
    %215 = vector.load %arg4[%c41, %c0_90, %c0_91] : memref<49x8x512xf32, #tpu.memory_space<vmem>>, vector<1x8x512xf32>
    %216 = vector.shape_cast %215 : vector<1x8x512xf32> to vector<8x512xf32>
    %217 = arith.mulf %214, %216 : vector<8x512xf32>
    %218 = arith.addf %213, %217 : vector<8x512xf32>
    %c467_i32 = arith.constant 467 : i32
    %219 = tpu.dynamic_rotate %8 by %c467_i32 dim 1 : vector<8x512xf32>, i32 -> vector<8x512xf32>
    %c42 = arith.constant 42 : index
    %c0_92 = arith.constant 0 : index
    %c0_93 = arith.constant 0 : index
    %220 = vector.load %arg4[%c42, %c0_92, %c0_93] : memref<49x8x512xf32, #tpu.memory_space<vmem>>, vector<1x8x512xf32>
    %221 = vector.shape_cast %220 : vector<1x8x512xf32> to vector<8x512xf32>
    %222 = arith.mulf %219, %221 : vector<8x512xf32>
    %223 = arith.addf %218, %222 : vector<8x512xf32>
    %c466_i32 = arith.constant 466 : i32
    %224 = tpu.dynamic_rotate %8 by %c466_i32 dim 1 : vector<8x512xf32>, i32 -> vector<8x512xf32>
    %c43 = arith.constant 43 : index
    %c0_94 = arith.constant 0 : index
    %c0_95 = arith.constant 0 : index
    %225 = vector.load %arg4[%c43, %c0_94, %c0_95] : memref<49x8x512xf32, #tpu.memory_space<vmem>>, vector<1x8x512xf32>
    %226 = vector.shape_cast %225 : vector<1x8x512xf32> to vector<8x512xf32>
    %227 = arith.mulf %224, %226 : vector<8x512xf32>
    %228 = arith.addf %223, %227 : vector<8x512xf32>
    %c465_i32 = arith.constant 465 : i32
    %229 = tpu.dynamic_rotate %8 by %c465_i32 dim 1 : vector<8x512xf32>, i32 -> vector<8x512xf32>
    %c44 = arith.constant 44 : index
    %c0_96 = arith.constant 0 : index
    %c0_97 = arith.constant 0 : index
    %230 = vector.load %arg4[%c44, %c0_96, %c0_97] : memref<49x8x512xf32, #tpu.memory_space<vmem>>, vector<1x8x512xf32>
    %231 = vector.shape_cast %230 : vector<1x8x512xf32> to vector<8x512xf32>
    %232 = arith.mulf %229, %231 : vector<8x512xf32>
    %233 = arith.addf %228, %232 : vector<8x512xf32>
    %c464_i32 = arith.constant 464 : i32
    %234 = tpu.dynamic_rotate %8 by %c464_i32 dim 1 : vector<8x512xf32>, i32 -> vector<8x512xf32>
    %c45 = arith.constant 45 : index
    %c0_98 = arith.constant 0 : index
    %c0_99 = arith.constant 0 : index
    %235 = vector.load %arg4[%c45, %c0_98, %c0_99] : memref<49x8x512xf32, #tpu.memory_space<vmem>>, vector<1x8x512xf32>
    %236 = vector.shape_cast %235 : vector<1x8x512xf32> to vector<8x512xf32>
    %237 = arith.mulf %234, %236 : vector<8x512xf32>
    %238 = arith.addf %233, %237 : vector<8x512xf32>
    %c463_i32 = arith.constant 463 : i32
    %239 = tpu.dynamic_rotate %8 by %c463_i32 dim 1 : vector<8x512xf32>, i32 -> vector<8x512xf32>
    %c46 = arith.constant 46 : index
    %c0_100 = arith.constant 0 : index
    %c0_101 = arith.constant 0 : index
    %240 = vector.load %arg4[%c46, %c0_100, %c0_101] : memref<49x8x512xf32, #tpu.memory_space<vmem>>, vector<1x8x512xf32>
    %241 = vector.shape_cast %240 : vector<1x8x512xf32> to vector<8x512xf32>
    %242 = arith.mulf %239, %241 : vector<8x512xf32>
    %243 = arith.addf %238, %242 : vector<8x512xf32>
    %c462_i32 = arith.constant 462 : i32
    %244 = tpu.dynamic_rotate %8 by %c462_i32 dim 1 : vector<8x512xf32>, i32 -> vector<8x512xf32>
    %c47 = arith.constant 47 : index
    %c0_102 = arith.constant 0 : index
    %c0_103 = arith.constant 0 : index
    %245 = vector.load %arg4[%c47, %c0_102, %c0_103] : memref<49x8x512xf32, #tpu.memory_space<vmem>>, vector<1x8x512xf32>
    %246 = vector.shape_cast %245 : vector<1x8x512xf32> to vector<8x512xf32>
    %247 = arith.mulf %244, %246 : vector<8x512xf32>
    %248 = arith.addf %243, %247 : vector<8x512xf32>
    %c461_i32 = arith.constant 461 : i32
    %249 = tpu.dynamic_rotate %8 by %c461_i32 dim 1 : vector<8x512xf32>, i32 -> vector<8x512xf32>
    %c48 = arith.constant 48 : index
    %c0_104 = arith.constant 0 : index
    %c0_105 = arith.constant 0 : index
    %250 = vector.load %arg4[%c48, %c0_104, %c0_105] : memref<49x8x512xf32, #tpu.memory_space<vmem>>, vector<1x8x512xf32>
    %251 = vector.shape_cast %250 : vector<1x8x512xf32> to vector<8x512xf32>
    %252 = arith.mulf %249, %251 : vector<8x512xf32>
    %253 = arith.addf %248, %252 : vector<8x512xf32>
    %c0_106 = arith.constant 0 : index
    %c0_107 = arith.constant 0 : index
    %254 = vector.load %arg5[%c0_106, %c0_107] : memref<8x1xf32, #tpu.memory_space<vmem>>, vector<8x1xf32>
    %255 = vector.broadcast %254 : vector<8x1xf32> to vector<8x512xf32>
    %256 = arith.addf %253, %255 : vector<8x512xf32>
    %257 = arith.mulf %7, %256 : vector<8x512xf32>
    %c0_108 = arith.constant 0 : index
    %c0_109 = arith.constant 0 : index
    %258 = vector.load %arg6[%c0_108, %c0_109] : memref<8x8xf32, #tpu.memory_space<vmem>>, vector<8x8xf32>
    %cst_110 = arith.constant dense<0.000000e+00> : vector<8x512xf32>
    %259 = tpu.matmul %258, %257, %cst_110 {dimension_numbers = #tpu.dot_dimension_numbers<[1], [0], [0], [1], [0, 0, 1, 1], [], []>} : vector<8x8xf32>, vector<8x512xf32>, vector<8x512xf32> -> vector<8x512xf32>
    %c0_111 = arith.constant 0 : index
    %c0_112 = arith.constant 0 : index
    %260 = vector.load %arg7[%c0_111, %c0_112] : memref<8x1xf32, #tpu.memory_space<vmem>>, vector<8x1xf32>
    %261 = vector.broadcast %260 : vector<8x1xf32> to vector<8x512xf32>
    %262 = arith.addf %259, %261 : vector<8x512xf32>
    %c0_113 = arith.constant 0 : index
    %c0_114 = arith.constant 0 : index
    %c0_115 = arith.constant 0 : index
    %263 = vector.load %arg8[%c0_113, %c0_114, %c0_115] : memref<1x8x512xf32, #tpu.memory_space<vmem>>, vector<1x8x512xf32>
    %264 = vector.shape_cast %263 : vector<1x8x512xf32> to vector<8x512xf32>
    %265 = vector.shape_cast %262 : vector<8x512xf32> to vector<1x8x512xf32>
    tpu.vector_store %arg8[%c0_113, %c0_114, %c0_115], %265 {strides = array<i32>} : memref<1x8x512xf32, #tpu.memory_space<vmem>>, vector<1x8x512xf32>,
    return
  }
  func.func @transform_0(%arg0: i32) -> (i32, i32, i32) {
    %c0_i32 = arith.constant 0 : i32
    %c0_i32_0 = arith.constant 0 : i32
    %c0_i32_1 = arith.constant 0 : i32
    return %arg0, %c0_i32, %c0_i32_0 : i32, i32, i32
  }
  func.func @transform_1(%arg0: i32) -> (i32, i32) {
    %c0_i32 = arith.constant 0 : i32
    %c0_i32_0 = arith.constant 0 : i32
    %c0_i32_1 = arith.constant 0 : i32
    return %c0_i32, %c0_i32_0 : i32, i32
  }
  func.func @transform_2(%arg0: i32) -> (i32, i32) {
    %c0_i32 = arith.constant 0 : i32
    %c0_i32_0 = arith.constant 0 : i32
    %c0_i32_1 = arith.constant 0 : i32
    return %c0_i32, %c0_i32_0 : i32, i32
  }
  func.func @transform_3(%arg0: i32) -> (i32, i32, i32) {
    %c0_i32 = arith.constant 0 : i32
    %c0_i32_0 = arith.constant 0 : i32
    %c0_i32_1 = arith.constant 0 : i32
    %c0_i32_2 = arith.constant 0 : i32
    return %c0_i32, %c0_i32_0, %c0_i32_1 : i32, i32, i32
  }
  func.func @transform_4(%arg0: i32) -> (i32, i32) {
    %c0_i32 = arith.constant 0 : i32
    %c0_i32_0 = arith.constant 0 : i32
    %c0_i32_1 = arith.constant 0 : i32
    return %c0_i32, %c0_i32_0 : i32, i32
  }
  func.func @transform_5(%arg0: i32) -> (i32, i32) {
    %c0_i32 = arith.constant 0 : i32
    %c0_i32_0 = arith.constant 0 : i32
    %c0_i32_1 = arith.constant 0 : i32
    return %c0_i32, %c0_i32_0 : i32, i32
  }
  func.func @transform_6(%arg0: i32) -> (i32, i32) {
    %c0_i32 = arith.constant 0 : i32
    %c0_i32_0 = arith.constant 0 : i32
    %c0_i32_1 = arith.constant 0 : i32
    return %c0_i32, %c0_i32_0 : i32, i32
  }
  func.func @transform_7(%arg0: i32) -> (i32, i32, i32) {
    %c0_i32 = arith.constant 0 : i32
    %c0_i32_0 = arith.constant 0 : i32
    %c0_i32_1 = arith.constant 0 : i32
    return %arg0, %c0_i32, %c0_i32_0 : i32, i32, i32
  }
}

</mosaic_0001>

<bundles_post_ra>
// kernel: tpu_custom_call.1
= control target key start
LH: loop header
LB: loop body
LE: loop exit
PB: predicated region body
PF: predicated region fallthrough
CT: control target
= control target key end

     0   :  { %12 = vsyncpa [#allocation3], 0  ;;  %s3133_s0 = inlined_call_operand.vmem [shape: f32[1,4,512], index: 0, kind: input, shape index: {}]   ;;  %s3134_s1 = inlined_call_operand.vmem [shape: f32[16,4], index: 1, kind: input, shape index: {}]   ;;  %s3135_s2 = inlined_call_operand.vmem [shape: f32[16,1], index: 2, kind: input, shape index: {}]   ;;  %s3136_s3 = inlined_call_operand.hbm [shape: f32[49,8,512], index: 3, kind: input, shape index: {}]   ;;  %s3137_s4 = inlined_call_operand.vmem [shape: f32[8,1], index: 4, kind: input, shape index: {}]   ;;  %s3138_s5 = inlined_call_operand.vmem [shape: f32[8,8], index: 5, kind: input, shape index: {}]   ;;  %s3139_s6 = inlined_call_operand.vmem [shape: f32[8,1], index: 6, kind: input, shape index: {}]   ;;  %s3140_s7 = inlined_call_operand.hbm [shape: f32[1,8,512], index: 7, kind: output, shape index: {}]  }
   0x1   :  { %13 = vsyncpa [#allocation4], 0  ;;  %s1790_s24 = smov [#allocation2]  }
   0x2   :  { %s25_s25 = sshll.u32 %s1790_s24, 4  ;;  %s26_s25 = int_to_ptr.vmem [resolvable:$true] %s25_s25 }
   0x3   :  { %s1754_s26 = scalar_lea.vmem %s26_s25, 25088  ;;  %p1759_p1 = scmp.lt.s32.totalorder %s26_s25, %s26_s25 }
   0x4   :  { %p1755_p0 = scmp.ne.s32.totalorder %s26_s25, %s1754_s26  ;;  %p1760_p2 = scmp.lt.s32.totalorder %s1754_s26, %s1754_s26 }
   0x6   :  { %p1761_p3 = por %p1760_p2, %p1759_p1 }
   0x8   :  { %p1762_p4 = pnand %p1761_p3, %p1755_p0 }
   0xa   :  { %1765 = shalt.err (!%p1762_p4)
}
   0xb   :  { %s1791_s27 = smov 512   ;;  %s1792_s28 = smov 32  }
   0xc   :  { %31 = dma.hbm_to_vmem [thread:$0]  %s3136_s3, 25088, %s26_s25, [#allocation3], %s1791_s27, %s1791_s27, %s1792_s28  }
   0xd   :  { %1786 = dma.done.wait [#allocation3], 25088  }
   0xe   :  { %1787 = vsyncadd [#allocation3], 4294942208  ;;  %v1793_v0 = vmov 0.0   ;;  %v1794_v1 = vmov 0   ;;  %v41_v2 = vld [vmem:[%s3133_s0] sm:$0xff]  ;;  %vm68_vm0 = vcmask 1043456  }
   0xf   :  { %141 = vmatprep.mubr.f32.mxu0 %v1793_v0  ;;  %218 = vmatprep.mubr.f32.mxu1 %v1793_v0  ;;  %v42_v3 = vld [vmem:[%s3133_s0 + $0x8] sm:$0xff]  ;;  %v59_v4 = vcombine.high %v41_v2, %v41_v2  ;;  %v43_v7 = vld [vmem:[%s3134_s1] sm:$0xff]  ;;  %vm61_vm1 = vcmask 31744   ;;  %s1797_s18 = smov 49   ;;  %s1798_s19 = smov 48  }
  0x10   :  { %1742 = vset.pattern.permute.xlu0 %v1794_v1  ;;  %1743 = vset.pattern.permute.xlu1 %v1794_v1  ;;  %v60_v5 = vcombine.high %v42_v3, %v42_v3  ;;  %v46_v6 = vld [vmem:[%s3135_s2 + $0x8] sm:$0xff]  ;;  %v45_v8 = vld [vmem:[%s3135_s2] sm:$0xff]  ;;  %s1796_s2 = smov 50   ;;  %s1799_s20 = smov 47  }
  0x11   :  { %54 = vperm.xlu0 %1742, %v46_v6   ;;  %1679 = vmatprep.subr.msk.mxu0 %vm68_vm0, %v59_v4  ;;  %v44_v9 = vld [vmem:[%s3134_s1 + $0x8] sm:$0xff]  ;;  %s1795_s1 = smov 51   ;;  %s1800_s21 = smov 46  }
  0x12   :  { %1683 = vmatprep.subr.msk.mxu1 %vm68_vm0, %v60_v5  ;;  %1680 = vmatpush1.msk.msra.mxu0 %vm68_vm0, %v41_v2  ;;  %s1801_s22 = smov 45   ;;  %s1802_s23 = smov 35  }
  0x13   :  { %1684 = vmatpush1.msk.msra.mxu1 %vm68_vm0, %v42_v3  ;;  %1681 = vmatmul.mubr.msk.f32.vlgmr.msra.gmra.mxu0 %vm61_vm1, %v43_v7  ;;  %s1803_s24 = smov 34   ;;  %s1804_s25 = smov 33  }
  0x14   :  { %1685 = vmatmul.mubr.msk.f32.vlgmr.msra.gmra.mxu1 %vm61_vm1, %v43_v7  ;;  %147 = vmatprep.mubr.f32.mxu0 %v1793_v0  ;;  %s1805_s26 = smov 31   ;;  %s1806_s27 = smov 30  }
  0x15   :  { %224 = vmatprep.mubr.f32.mxu1 %v1793_v0  ;;  %49 = vperm.xlu0 %1742, %v45_v8   ;;  %s1807_s29 = smov 29   ;;  %s1808_s30 = smov 19  }
  0x16   :  { %s1810_s8 = smov 17   ;;  %s1811_s9 = smov 16  }
  0x17   :  { %1682 = vmatmul.mubr.msk.f32.gmra.mxu0 %vm61_vm1, %v44_v9  ;;  %s1812_s10 = smov 15   ;;  %s1813_s11 = smov 14  }
  0x18   :  { %1686 = vmatmul.mubr.msk.f32.gmra.mxu1 %vm61_vm1, %v44_v9  ;;  %1582 = vmatprep.mubr.f32.mxu0 %v1793_v0  ;;  %s1814_s3 = smov 13   ;;  %s1815_s12 = smov 3  }
  0x19   :  { %1653 = vmatprep.mubr.f32.mxu1 %v1793_v0  ;;  %s1816_s13 = smov 2   ;;  %s1817_s14 = smov 1  }
  0x1a   :  { %s1818_s15 = smov 127   ;;  %s1819_s16 = smov 126  }
  0x1b   :  { %s1820_s0 = smov 125   ;;  %s1821_s17 = smov 115  }
  0x8c   :  { %v55_v14 = vpop.permute.xlu0 %54 }
  0x90   :  { %v1981_v23 = vpop.permute.xlu0 %49 }
  0x91   :  { %3172 = vst [vmem:[#allocation12_spill] sm:$0xff] %v1981_v23 }
  0xd3   :  { %v1905_v10 = vpop.f32.mrf.mxu0 }
  0xd4   :  { %3168 = vst [vmem:[#allocation8_spill] sm:$0xff] %v1905_v10  ;;  %v1907_v11 = vpop.f32.mrf.mxu1 }
  0xd5   :  { %3169 = vst [vmem:[#allocation9_spill] sm:$0xff] %v1907_v11  ;;  %v1909_v12 = vpop.f32.mrf.mxu0 }
  0xd6   :  { %3170 = vst [vmem:[#allocation10_spill] sm:$0xff] %v1909_v12  ;;  %v1911_v13 = vpop.f32.mrf.mxu1  ;;  %v239_v12 = vlaneseq }
  0xd7   :  { %3171 = vst [vmem:[#allocation11_spill] sm:$0xff] %v1911_v13  ;;  %v149_v15 = vpop.f32.mrf.mxu0 }
  0xd8   :  { %v226_v16 = vpop.f32.mrf.mxu1  ;;  %v1913_v17 = vadd.f32 %v149_v15, %v55_v14  ;;  %v2160_v23 = vand.u32 127, %v239_v12 }
  0xd9   :  { %v1915_v18 = vadd.f32 %v226_v16, %v55_v14  ;;  %v151_v19 = vpop.f32.mrf.mxu0 }
  0xda   :  { %231 = vrot.lane.b32.xlu1 %v1913_v17, %s1795_s1  ;;  %v1919_v20 = vadd.f32 %v151_v19, %v55_v14  ;;  %v228_v21 = vpop.f32.mrf.mxu1  ;;  %vm241_vm2 = vcmp.lt.s32.totalorder %v2160_v23, 51  ;;  %vm266_vm3 = vcmp.lt.s32.totalorder %v2160_v23, 50  ;;  %vm292_vm4 = vcmp.lt.s32.totalorder %v2160_v23, 49 }
  0xdb   :  { %235 = vrot.lane.b32.xlu0 %v1915_v18, %s1795_s1  ;;  %v1923_v22 = vadd.f32 %v228_v21, %v55_v14  ;;  %vm318_vm5 = vcmp.lt.s32.totalorder %v2160_v23, 48  ;;  %vm344_vm6 = vcmp.lt.s32.totalorder %v2160_v23, 47  ;;  %vm370_vm7 = vcmp.lt.s32.totalorder %v2160_v23, 46 }
  0xdc   :  { %vm396_vm8 = vcmp.lt.s32.totalorder %v2160_v23, 45  ;;  %vm422_vm9 = vcmp.lt.s32.totalorder %v2160_v23, 35  ;;  %vm448_vm10 = vcmp.lt.s32.totalorder %v2160_v23, 34  ;;  %vm474_vm11 = vcmp.lt.s32.totalorder %v2160_v23, 33 }
  0xdd   :  { %vm500_vm12 = vcmp.lt.s32.totalorder %v2160_v23, 32  ;;  %vm526_vm13 = vcmp.lt.s32.totalorder %v2160_v23, 31  ;;  %vm552_vm14 = vcmp.lt.s32.totalorder %v2160_v23, 30  ;;  %vm578_vm15 = vcmp.lt.s32.totalorder %v2160_v23, 29 }
  0xde   :  { %233 = vrot.lane.b32.xlu1 %v1919_v20, %s1795_s1  ;;  %vm604_vm0 = vcmp.lt.s32.totalorder %v2160_v23, 19  ;;  %vm630_vm1 = vcmp.lt.s32.totalorder %v2160_v23, 18 }
  0xdf   :  { %258 = vrot.lane.b32.xlu0 %v1913_v17, %s1796_s2 }
  0xe2   :  { %237 = vrot.lane.b32.xlu1 %v1923_v22, %s1795_s1  ;;  %s1822_s1 = smov 114  }
  0xe3   :  { %262 = vrot.lane.b32.xlu0 %v1915_v18, %s1796_s2 }
  0xe6   :  { %260 = vrot.lane.b32.xlu1 %v1919_v20, %s1796_s2 }
  0xe7   :  { %284 = vrot.lane.b32.xlu0 %v1913_v17, %s1797_s18 }
  0xea   :  { %264 = vrot.lane.b32.xlu1 %v1923_v22, %s1796_s2  ;;  %s1823_s2 = smov 113  }
  0xeb   :  { %288 = vrot.lane.b32.xlu0 %v1915_v18, %s1797_s18 }
  0xee   :  { %286 = vrot.lane.b32.xlu1 %v1919_v20, %s1797_s18 }
  0xef   :  { %310 = vrot.lane.b32.xlu0 %v1913_v17, %s1798_s19 }
  0xf2   :  { %290 = vrot.lane.b32.xlu1 %v1923_v22, %s1797_s18  ;;  %s1824_s18 = smov 112  }
  0xf3   :  { %314 = vrot.lane.b32.xlu0 %v1915_v18, %s1798_s19 }
  0xf6   :  { %312 = vrot.lane.b32.xlu1 %v1919_v20, %s1798_s19 }
  0xf7   :  { %336 = vrot.lane.b32.xlu0 %v1913_v17, %s1799_s20 }
  0xfa   :  { %316 = vrot.lane.b32.xlu1 %v1923_v22, %s1798_s19  ;;  %s1825_s19 = smov 111  }
  0xfb   :  { %340 = vrot.lane.b32.xlu0 %v1915_v18, %s1799_s20 }
  0xfe   :  { %338 = vrot.lane.b32.xlu1 %v1919_v20, %s1799_s20 }
  0xff   :  { %362 = vrot.lane.b32.xlu0 %v1913_v17, %s1800_s21 }
 0x102   :  { %342 = vrot.lane.b32.xlu1 %v1923_v22, %s1799_s20  ;;  %s1826_s20 = smov 110  }
 0x103   :  { %366 = vrot.lane.b32.xlu0 %v1915_v18, %s1800_s21 }
 0x106   :  { %364 = vrot.lane.b32.xlu1 %v1919_v20, %s1800_s21 }
 0x107   :  { %388 = vrot.lane.b32.xlu0 %v1913_v17, %s1801_s22 }
 0x10a   :  { %368 = vrot.lane.b32.xlu1 %v1923_v22, %s1800_s21  ;;  %s1827_s21 = smov 109  }
 0x10b   :  { %392 = vrot.lane.b32.xlu0 %v1915_v18, %s1801_s22 }
 0x10e   :  { %390 = vrot.lane.b32.xlu1 %v1919_v20, %s1801_s22 }
 0x10f   :  { %414 = vrot.lane.b32.xlu0 %v1913_v17, %s1802_s23 }
 0x112   :  { %394 = vrot.lane.b32.xlu1 %v1923_v22, %s1801_s22  ;;  %s1828_s22 = smov 99  }
 0x113   :  { %418 = vrot.lane.b32.xlu0 %v1915_v18, %s1802_s23 }
 0x116   :  { %416 = vrot.lane.b32.xlu1 %v1919_v20, %s1802_s23 }
 0x117   :  { %440 = vrot.lane.b32.xlu0 %v1913_v17, %s1803_s24 }
 0x11a   :  { %420 = vrot.lane.b32.xlu1 %v1923_v22, %s1802_s23  ;;  %s1829_s23 = smov 98  }
 0x11b   :  { %444 = vrot.lane.b32.xlu0 %v1915_v18, %s1803_s24 }
 0x11e   :  { %442 = vrot.lane.b32.xlu1 %v1919_v20, %s1803_s24 }
 0x11f   :  { %466 = vrot.lane.b32.xlu0 %v1913_v17, %s1804_s25 }
 0x122   :  { %446 = vrot.lane.b32.xlu1 %v1923_v22, %s1803_s24  ;;  %s1830_s24 = smov 97  }
 0x123   :  { %470 = vrot.lane.b32.xlu0 %v1915_v18, %s1804_s25 }
 0x126   :  { %468 = vrot.lane.b32.xlu1 %v1919_v20, %s1804_s25 }
 0x127   :  { %492 = vrot.lane.b32.xlu0 %v1913_v17, %s1792_s28 }
 0x12a   :  { %472 = vrot.lane.b32.xlu1 %v1923_v22, %s1804_s25  ;;  %s1831_s25 = smov 96  }
 0x12b   :  { %496 = vrot.lane.b32.xlu0 %v1915_v18, %s1792_s28 }
 0x12e   :  { %494 = vrot.lane.b32.xlu1 %v1919_v20, %s1792_s28 }
 0x12f   :  { %518 = vrot.lane.b32.xlu0 %v1913_v17, %s1805_s26 }
 0x132   :  { %498 = vrot.lane.b32.xlu1 %v1923_v22, %s1792_s28  ;;  %s1809_s28 = smov 18  }
 0x133   :  { %522 = vrot.lane.b32.xlu0 %v1915_v18, %s1805_s26 }
 0x136   :  { %520 = vrot.lane.b32.xlu1 %v1919_v20, %s1805_s26 }
 0x137   :  { %544 = vrot.lane.b32.xlu0 %v1913_v17, %s1806_s27 }
 0x13a   :  { %524 = vrot.lane.b32.xlu1 %v1923_v22, %s1805_s26  ;;  %s1832_s26 = smov 95  }
 0x13b   :  { %548 = vrot.lane.b32.xlu0 %v1915_v18, %s1806_s27 }
 0x13e   :  { %546 = vrot.lane.b32.xlu1 %v1919_v20, %s1806_s27 }
 0x13f   :  { %570 = vrot.lane.b32.xlu0 %v1913_v17, %s1807_s29 }
 0x142   :  { %550 = vrot.lane.b32.xlu1 %v1923_v22, %s1806_s27  ;;  %s1833_s27 = smov 94  }
 0x143   :  { %574 = vrot.lane.b32.xlu0 %v1915_v18, %s1807_s29 }
 0x146   :  { %572 = vrot.lane.b32.xlu1 %v1919_v20, %s1807_s29 }
 0x147   :  { %596 = vrot.lane.b32.xlu0 %v1913_v17, %s1808_s30 }
 0x14a   :  { %576 = vrot.lane.b32.xlu1 %v1923_v22, %s1807_s29  ;;  %s1834_s29 = smov 93  }
 0x14b   :  { %600 = vrot.lane.b32.xlu0 %v1915_v18, %s1808_s30 }
 0x14c   :  { %v1987_v25 = vpop.permute.xlu1 %231 }
 0x14d   :  { %v1985_v24 = vpop.permute.xlu0 %235 }
 0x14e   :  { %598 = vrot.lane.b32.xlu1 %v1919_v20, %s1808_s30 }
 0x14f   :  { %622 = vrot.lane.b32.xlu0 %v1913_v17, %s1809_s28 }
 0x150   :  { %v1993_v27 = vpop.permute.xlu1 %233 }
 0x151   :  { %v1991_v26 = vpop.permute.xlu0 %258  ;;  %v244_v12 = vsel %vm241_vm2, %v1987_v25, %v1993_v27 }
 0x152   :  { %602 = vrot.lane.b32.xlu1 %v1923_v22, %s1808_s30  ;;  %s1835_s30 = smov 83  }
 0x153   :  { %626 = vrot.lane.b32.xlu0 %v1915_v18, %s1809_s28 }
 0x154   :  { %v1999_v29 = vpop.permute.xlu1 %237 }
 0x155   :  { %v1997_v28 = vpop.permute.xlu0 %262 }
 0x156   :  { %624 = vrot.lane.b32.xlu1 %v1919_v20, %s1809_s28 }
 0x157   :  { %648 = vrot.lane.b32.xlu0 %v1913_v17, %s1810_s8 }
 0x158   :  { %v2005_v31 = vpop.permute.xlu1 %260 }
 0x159   :  { %v2003_v30 = vpop.permute.xlu0 %284 }
 0x15a   :  { %628 = vrot.lane.b32.xlu1 %v1923_v22, %s1809_s28  ;;  %s1836_s28 = smov 82  }
 0x15b   :  { %652 = vrot.lane.b32.xlu0 %v1915_v18, %s1810_s8 }
 0x15c   :  { %v2011_v33 = vpop.permute.xlu1 %264 }
 0x15d   :  { %v2009_v32 = vpop.permute.xlu0 %288 }
 0x15e   :  { %650 = vrot.lane.b32.xlu1 %v1919_v20, %s1810_s8 }
 0x15f   :  { %674 = vrot.lane.b32.xlu0 %v1913_v17, %s1811_s9 }
 0x160   :  { %v2017_v35 = vpop.permute.xlu1 %286 }
 0x161   :  { %v2015_v34 = vpop.permute.xlu0 %310 }
 0x162   :  { %654 = vrot.lane.b32.xlu1 %v1923_v22, %s1810_s8  ;;  %s1837_s8 = smov 81  }
 0x163   :  { %678 = vrot.lane.b32.xlu0 %v1915_v18, %s1811_s9 }
 0x164   :  { %v2023_v37 = vpop.permute.xlu1 %290 }
 0x165   :  { %v2021_v36 = vpop.permute.xlu0 %314 }
 0x166   :  { %676 = vrot.lane.b32.xlu1 %v1919_v20, %s1811_s9 }
 0x167   :  { %700 = vrot.lane.b32.xlu0 %v1913_v17, %s1812_s10 }
 0x168   :  { %v2029_v39 = vpop.permute.xlu1 %312 }
 0x169   :  { %v2027_v38 = vpop.permute.xlu0 %336 }
 0x16a   :  { %680 = vrot.lane.b32.xlu1 %v1923_v22, %s1811_s9  ;;  %s1838_s9 = smov 80  }
 0x16b   :  { %704 = vrot.lane.b32.xlu0 %v1915_v18, %s1812_s10 }
 0x16c   :  { %v2035_v41 = vpop.permute.xlu1 %316 }
 0x16d   :  { %v2033_v40 = vpop.permute.xlu0 %340 }
 0x16e   :  { %702 = vrot.lane.b32.xlu1 %v1919_v20, %s1812_s10 }
 0x16f   :  { %726 = vrot.lane.b32.xlu0 %v1913_v17, %s1813_s11 }
 0x170   :  { %v2041_v43 = vpop.permute.xlu1 %338 }
 0x171   :  { %v2039_v42 = vpop.permute.xlu0 %362 }
 0x172   :  { %706 = vrot.lane.b32.xlu1 %v1923_v22, %s1812_s10  ;;  %s1839_s10 = smov 79  }
 0x173   :  { %730 = vrot.lane.b32.xlu0 %v1915_v18, %s1813_s11 }
 0x174   :  { %v2047_v45 = vpop.permute.xlu1 %342 }
 0x175   :  { %v2045_v44 = vpop.permute.xlu0 %366 }
 0x176   :  { %728 = vrot.lane.b32.xlu1 %v1919_v20, %s1813_s11 }
 0x177   :  { %752 = vrot.lane.b32.xlu0 %v1913_v17, %s1814_s3 }
 0x178   :  { %v2053_v47 = vpop.permute.xlu1 %364 }
 0x179   :  { %v2051_v46 = vpop.permute.xlu0 %388 }
 0x17a   :  { %732 = vrot.lane.b32.xlu1 %v1923_v22, %s1813_s11  ;;  %s1840_s11 = smov 78  }
 0x17b   :  { %756 = vrot.lane.b32.xlu0 %v1915_v18, %s1814_s3 }
 0x17c   :  { %v2059_v49 = vpop.permute.xlu1 %368 }
 0x17d   :  { %v2057_v48 = vpop.permute.xlu0 %392 }
 0x17e   :  { %754 = vrot.lane.b32.xlu1 %v1919_v20, %s1814_s3 }
 0x17f   :  { %778 = vrot.lane.b32.xlu0 %v1913_v17, %s1815_s12 }
 0x180   :  { %v2065_v51 = vpop.permute.xlu1 %390 }
 0x181   :  { %v2063_v50 = vpop.permute.xlu0 %414 }
 0x182   :  { %758 = vrot.lane.b32.xlu1 %v1923_v22, %s1814_s3  ;;  %s1841_s3 = smov 77  }
 0x183   :  { %782 = vrot.lane.b32.xlu0 %v1915_v18, %s1815_s12 }
 0x184   :  { %v2071_v53 = vpop.permute.xlu1 %394 }
 0x185   :  { %v2069_v52 = vpop.permute.xlu0 %418 }
 0x186   :  { %780 = vrot.lane.b32.xlu1 %v1919_v20, %s1815_s12 }
 0x187   :  { %804 = vrot.lane.b32.xlu0 %v1913_v17, %s1816_s13 }
 0x188   :  { %v2077_v55 = vpop.permute.xlu1 %416 }
 0x189   :  { %v2075_v54 = vpop.permute.xlu0 %440 }
 0x18a   :  { %784 = vrot.lane.b32.xlu1 %v1923_v22, %s1815_s12 }
 0x18b   :  { %808 = vrot.lane.b32.xlu0 %v1915_v18, %s1816_s13 }
 0x18c   :  { %v2083_v57 = vpop.permute.xlu1 %420 }
 0x18d   :  { %v2081_v56 = vpop.permute.xlu0 %444 }
 0x18e   :  { %806 = vrot.lane.b32.xlu1 %v1919_v20, %s1816_s13 }
 0x18f   :  { %830 = vrot.lane.b32.xlu0 %v1913_v17, %s1817_s14 }
 0x190   :  { %v2089_v59 = vpop.permute.xlu1 %442 }
 0x191   :  { %v2087_v58 = vpop.permute.xlu0 %466 }
 0x192   :  { %810 = vrot.lane.b32.xlu1 %v1923_v22, %s1816_s13 }
 0x193   :  { %834 = vrot.lane.b32.xlu0 %v1915_v18, %s1817_s14 }
 0x194   :  { %v2095_v61 = vpop.permute.xlu1 %446 }
 0x195   :  { %v2093_v60 = vpop.permute.xlu0 %470 }
 0x196   :  { %832 = vrot.lane.b32.xlu1 %v1919_v20, %s1817_s14 }
 0x197   :  { %869 = vrot.lane.b32.xlu0 %v1913_v17, %s1818_s15 }
 0x198   :  { %v2101_v63 = vpop.permute.xlu1 %468 }
 0x199   :  { %v2099_v62 = vpop.permute.xlu0 %492 }
 0x19a   :  { %3173 = vst [vmem:[#allocation13_spill] sm:$0xff] %v2099_v62  ;;  %836 = vrot.lane.b32.xlu1 %v1923_v22, %s1817_s14  ;;  %v299_v62 = vld [vmem:[#allocation2 + $0x48] sm:$0xff] }
 0x19b   :  { %873 = vrot.lane.b32.xlu0 %v1915_v18, %s1818_s15 }
 0x19c   :  { %v2107_v1 = vpop.permute.xlu1 %472 }
 0x19d   :  { %v2105_v0 = vpop.permute.xlu0 %496  ;;  %3175 = vst [vmem:[#allocation15_spill] sm:$0xff] %v2107_v1  ;;  %v300_v1 = vld [vmem:[#allocation2 + $0x50] sm:$0xff] }
 0x19e   :  { %3174 = vst [vmem:[#allocation14_spill] sm:$0xff] %v2105_v0  ;;  %871 = vrot.lane.b32.xlu1 %v1919_v20, %s1818_s15 }
 0x19f   :  { %895 = vrot.lane.b32.xlu0 %v1913_v17, %s1819_s16 }
 0x1a0   :  { %v2113_v3 = vpop.permute.xlu1 %494 }
 0x1a1   :  { %v2111_v2 = vpop.permute.xlu0 %518  ;;  %3177 = vst [vmem:[#allocation17_spill] sm:$0xff] %v2113_v3 }
 0x1a2   :  { %3176 = vst [vmem:[#allocation16_spill] sm:$0xff] %v2111_v2  ;;  %875 = vrot.lane.b32.xlu1 %v1923_v22, %s1818_s15  ;;  %v275_v2 = vld [vmem:[#allocation2 + $0x38] sm:$0xff] }
 0x1a3   :  { %899 = vrot.lane.b32.xlu0 %v1915_v18, %s1819_s16 }
 0x1a4   :  { %v2119_v5 = vpop.permute.xlu1 %498 }
 0x1a5   :  { %v2117_v4 = vpop.permute.xlu0 %522  ;;  %3179 = vst [vmem:[#allocation19_spill] sm:$0xff] %v2119_v5 }
 0x1a6   :  { %3178 = vst [vmem:[#allocation18_spill] sm:$0xff] %v2117_v4  ;;  %897 = vrot.lane.b32.xlu1 %v1919_v20, %s1819_s16 }
 0x1a7   :  { %921 = vrot.lane.b32.xlu0 %v1913_v17, %s1820_s0 }
 0x1a8   :  { %v2125_v7 = vpop.permute.xlu1 %520 }
 0x1a9   :  { %v2123_v6 = vpop.permute.xlu0 %544  ;;  %3181 = vst [vmem:[#allocation21_spill] sm:$0xff] %v2125_v7  ;;  %v267_v7 = vsel %vm266_vm3, %v1997_v28, %v2011_v33 }
 0x1aa   :  { %3180 = vst [vmem:[#allocation20_spill] sm:$0xff] %v2123_v6  ;;  %901 = vrot.lane.b32.xlu1 %v1923_v22, %s1819_s16  ;;  %v249_v6 = vld [vmem:[#allocation2 + $0x18] sm:$0xff]  ;;  %s1842_s16 = smov [#allocation5]  }
 0x1ab   :  { %925 = vrot.lane.b32.xlu0 %v1915_v18, %s1820_s0 }
 0x1ac   :  { %v2131_v9 = vpop.permute.xlu1 %524 }
 0x1ad   :  { %v2129_v8 = vpop.permute.xlu0 %548  ;;  %3183 = vst [vmem:[#allocation23_spill] sm:$0xff] %v2131_v9  ;;  %v272_v9 = vld [vmem:[#allocation2 + $0x20] sm:$0xff] }
 0x1ae   :  { %3182 = vst [vmem:[#allocation22_spill] sm:$0xff] %v2129_v8  ;;  %923 = vrot.lane.b32.xlu1 %v1919_v20, %s1820_s0  ;;  %v246_v8 = vld [vmem:[#allocation2] sm:$0xff] }
 0x1af   :  { %947 = vrot.lane.b32.xlu0 %v1913_v17, %s1821_s17 }
 0x1b0   :  { %v2137_v15 = vpop.permute.xlu1 %546 }
 0x1b1   :  { %v2135_v14 = vpop.permute.xlu0 %570  ;;  %3185 = vst [vmem:[#allocation25_spill] sm:$0xff] %v2137_v15  ;;  %v242_v15 = vsel %vm241_vm2, %v1985_v24, %v1999_v29 }
 0x1b2   :  { %3184 = vst [vmem:[#allocation24_spill] sm:$0xff] %v2135_v14  ;;  %927 = vrot.lane.b32.xlu1 %v1923_v22, %s1820_s0  ;;  %v247_v14 = vld [vmem:[#allocation2 + $0x8] sm:$0xff]  ;;  %s1670_s0 = sshll.u32 %s1842_s16, 4  ;;  %s1671_s0 = int_to_ptr.vmem [resolvable:$true] %s1670_s0 }
 0x1b3   :  { %951 = vrot.lane.b32.xlu0 %v1915_v18, %s1821_s17  ;;  %v251_v5 = vmul.f32 %v247_v14, %v244_v12  ;;  %v298_v14 = vld [vmem:[#allocation2 + $0x40] sm:$0xff]  ;;  %p1771_p6 = scmp.lt.s32.totalorder %s1671_s0, %s1671_s0 }
 0x1b4   :  { %v2143_v19 = vpop.permute.xlu1 %550 }
 0x1b5   :  { %v2141_v16 = vpop.permute.xlu0 %574  ;;  %3187 = vst [vmem:[#allocation27_spill] sm:$0xff] %v2143_v19  ;;  %v243_v19 = vsel %vm241_vm2, %v1993_v27, %v1985_v24  ;;  %v270_v27 = vsel %vm266_vm3, %v2011_v33, %v1991_v26  ;;  %v279_v33 = vmul.f32 %v275_v2, %v267_v7  ;;  %v320_v2 = vsel %vm318_vm5, %v2029_v39, %v2021_v36 }
 0x1b6   :  { %3186 = vst [vmem:[#allocation26_spill] sm:$0xff] %v2141_v16  ;;  %949 = vrot.lane.b32.xlu1 %v1919_v20, %s1821_s17 }
 0x1b7   :  { %973 = vrot.lane.b32.xlu0 %v1913_v17, %s1822_s1 }
 0x1b8   :  { %v2149_v13 = vpop.permute.xlu1 %572 }
 0x1b9   :  { %v2147_v21 = vpop.permute.xlu0 %596  ;;  %3189 = vst [vmem:[#allocation29_spill] sm:$0xff] %v2149_v13  ;;  %v268_v13 = vsel %vm266_vm3, %v2005_v31, %v1997_v28  ;;  %v295_v28 = vsel %vm292_vm4, %v2003_v30, %v2017_v35 }
 0x1ba   :  { %3188 = vst [vmem:[#allocation28_spill] sm:$0xff] %v2147_v21  ;;  %953 = vrot.lane.b32.xlu1 %v1923_v22, %s1821_s17 }
 0x1bb   :  { %977 = vrot.lane.b32.xlu0 %v1915_v18, %s1822_s1 }
 0x1bc   :  { %v2155_v10 = vpop.permute.xlu1 %576 }
 0x1bd   :  { %v2153_v11 = vpop.permute.xlu0 %600  ;;  %3191 = vst [vmem:[#allocation31_spill] sm:$0xff] %v2155_v10 }
 0x1be   :  { %3190 = vst [vmem:[#allocation30_spill] sm:$0xff] %v2153_v11  ;;  %975 = vrot.lane.b32.xlu1 %v1919_v20, %s1822_s1 }
 0x1bf   :  { %999 = vrot.lane.b32.xlu0 %v1913_v17, %s1823_s2 }
 0x1c0   :  { %v2164_v16 = vpop.permute.xlu1 %598 }
 0x1c1   :  { %v2162_v21 = vpop.permute.xlu0 %622  ;;  %3193 = vst [vmem:[#allocation33_spill] sm:$0xff] %v2164_v16  ;;  %v274_v16 = vld [vmem:[#allocation2 + $0x30] sm:$0xff] }
 0x1c2   :  { %3192 = vst [vmem:[#allocation32_spill] sm:$0xff] %v2162_v21  ;;  %979 = vrot.lane.b32.xlu1 %v1923_v22, %s1822_s1  ;;  %v273_v21 = vld [vmem:[#allocation2 + $0x28] sm:$0xff] }
 0x1c3   :  { %1003 = vrot.lane.b32.xlu0 %v1915_v18, %s1823_s2 }
 0x1c4   :  { %v2173_v10 = vpop.permute.xlu1 %602 }
 0x1c5   :  { %v2171_v11 = vpop.permute.xlu0 %626  ;;  %3195 = vst [vmem:[#allocation35_spill] sm:$0xff] %v2173_v10  ;;  %v248_v10 = vld [vmem:[#allocation2 + $0x10] sm:$0xff] }
 0x1c6   :  { %3194 = vst [vmem:[#allocation34_spill] sm:$0xff] %v2171_v11  ;;  %v269_v11 = vsel %vm266_vm3, %v1991_v26, %v2005_v31  ;;  %1001 = vrot.lane.b32.xlu1 %v1919_v20, %s1823_s2  ;;  %v245_v31 = vsel %vm241_vm2, %v1999_v29, %v1987_v25  ;;  %v278_v29 = vmul.f32 %v274_v16, %v268_v13  ;;  %v301_v16 = vld [vmem:[#allocation2 + $0x58] sm:$0xff]  ;;  %vm656_vm2 = vcmp.lt.s32.totalorder %v2160_v23, 17 }
 0x1c7   :  { %1025 = vrot.lane.b32.xlu0 %v1913_v17, %s1824_s18  ;;  %v277_v24 = vmul.f32 %v273_v21, %v269_v11  ;;  %v252_v3 = vmul.f32 %v248_v10, %v243_v19  ;;  %v250_v0 = vmul.f32 %v246_v8, %v245_v31  ;;  %v294_v26 = vsel %vm292_vm4, %v2017_v35, %v2009_v32  ;;  %v325_v19 = vld [vmem:[#allocation2 + $0x68] sm:$0xff]  ;;  %v326_v21 = vld [vmem:[#allocation2 + $0x70] sm:$0xff]  ;;  %v327_v31 = vld [vmem:[#allocation2 + $0x78] sm:$0xff] }
 0x1c8   :  { %v2215_v4 = vpop.permute.xlu1 %624  ;;  %v253_v11 = vmul.f32 %v249_v6, %v242_v15  ;;  %v276_v13 = vmul.f32 %v272_v9, %v270_v27  ;;  %v296_v10 = vsel %vm292_vm4, %v2023_v37, %v2003_v30  ;;  %v303_v8 = vmul.f32 %v299_v62, %v295_v28  ;;  %v351_v27 = vld [vmem:[#allocation2 + $0x88] sm:$0xff] }
 0x1c9   :  { %v2213_v25 = vpop.permute.xlu0 %648  ;;  %v293_v35 = vsel %vm292_vm4, %v2009_v32, %v2023_v37  ;;  %v321_v6 = vsel %vm318_vm5, %v2015_v34, %v2029_v39  ;;  %v281_v7 = vadd.f32 %v277_v24, %v251_v5  ;;  %v282_v9 = vadd.f32 %v278_v29, %v252_v3  ;;  %v324_v32 = vld [vmem:[#allocation2 + $0x60] sm:$0xff]  ;;  %v352_v24 = vld [vmem:[#allocation2 + $0x90] sm:$0xff] }
 0x1ca   :  { %3196 = vst [vmem:[#allocation36_spill] sm:$0xff] %v2213_v25  ;;  %1005 = vrot.lane.b32.xlu1 %v1923_v22, %s1823_s2  ;;  %v304_v15 = vmul.f32 %v300_v1, %v294_v26  ;;  %v322_v37 = vsel %vm318_vm5, %v2035_v41, %v2015_v34  ;;  %v302_v12 = vmul.f32 %v298_v14, %v296_v10  ;;  %vm682_vm3 = vcmp.lt.s32.totalorder %v2160_v23, 16 }
 0x1cb   :  { %1029 = vrot.lane.b32.xlu0 %v1915_v18, %s1824_s18  ;;  %v319_v39 = vsel %vm318_vm5, %v2021_v36, %v2035_v41  ;;  %v347_v3 = vsel %vm344_vm6, %v2027_v38, %v2041_v43  ;;  %v305_v34 = vmul.f32 %v301_v16, %v293_v35  ;;  %v329_v1 = vmul.f32 %v325_v19, %v321_v6  ;;  %v350_v16 = vld [vmem:[#allocation2 + $0x80] sm:$0xff]  ;;  %v378_v6 = vld [vmem:[#allocation2 + $0xb0] sm:$0xff] }
 0x1cc   :  { %v2248_v62 = vpop.permute.xlu1 %628  ;;  %v330_v5 = vmul.f32 %v326_v21, %v320_v2  ;;  %v346_v36 = vsel %vm344_vm6, %v2041_v43, %v2033_v40  ;;  %v280_v41 = vadd.f32 %v276_v13, %v250_v0  ;;  %v283_v29 = vadd.f32 %v279_v33, %v253_v11  ;;  %v353_v43 = vld [vmem:[#allocation2 + $0x98] sm:$0xff]  ;;  %v377_v2 = vld [vmem:[#allocation2 + $0xa8] sm:$0xff] }
 0x1cd   :  { %v2246_v30 = vpop.permute.xlu0 %652  ;;  %3198 = vst [vmem:[#allocation38_spill] sm:$0xff] %v2248_v62  ;;  %v307_v28 = vadd.f32 %v303_v8, %v281_v7  ;;  %v328_v26 = vmul.f32 %v324_v32, %v322_v37  ;;  %v331_v25 = vmul.f32 %v327_v31, %v319_v39  ;;  %v355_v62 = vmul.f32 %v351_v27, %v347_v3  ;;  %v376_v37 = vld [vmem:[#allocation2 + $0xa0] sm:$0xff]  ;;  %v379_v39 = vld [vmem:[#allocation2 + $0xb8] sm:$0xff]  ;;  %v403_v27 = vld [vmem:[#allocation2 + $0xc8] sm:$0xff] }
 0x1ce   :  { %3197 = vst [vmem:[#allocation37_spill] sm:$0xff] %v2246_v30  ;;  %1027 = vrot.lane.b32.xlu1 %v1919_v20, %s1824_s18  ;;  %v308_v30 = vadd.f32 %v304_v15, %v282_v9  ;;  %v348_v35 = vsel %vm344_vm6, %v2047_v45, %v2027_v38  ;;  %v306_v19 = vadd.f32 %v302_v12, %v280_v41  ;;  %v404_v3 = vld [vmem:[#allocation2 + $0xd0] sm:$0xff]  ;;  %v429_v41 = vld [vmem:[#allocation2 + $0xe8] sm:$0xff]  ;;  %vm708_vm4 = vcmp.lt.s32.totalorder %v2160_v23, 15 }
 0x1cf   :  { %1051 = vrot.lane.b32.xlu0 %v1913_v17, %s1825_s19  ;;  %v356_v21 = vmul.f32 %v352_v24, %v346_v36  ;;  %v345_v0 = vsel %vm344_vm6, %v2033_v40, %v2047_v45  ;;  %v309_v11 = vadd.f32 %v305_v34, %v283_v29  ;;  %v333_v13 = vadd.f32 %v329_v1, %v307_v28  ;;  %v405_v24 = vld [vmem:[#allocation2 + $0xd8] sm:$0xff] }
 0x1d0   :  { %v2273_v10 = vpop.permute.xlu1 %650  ;;  %v334_v33 = vadd.f32 %v330_v5, %v308_v30  ;;  %v332_v38 = vadd.f32 %v328_v26, %v306_v19  ;;  %v354_v8 = vmul.f32 %v350_v16, %v348_v35  ;;  %v372_v40 = vsel %vm370_vm7, %v2053_v47, %v2045_v44  ;;  %v430_v35 = vld [vmem:[#allocation2 + $0xf0] sm:$0xff] }
 0x1d1   :  { %v2271_v14 = vpop.permute.xlu0 %674  ;;  %v373_v45 = vsel %vm370_vm7, %v2039_v42, %v2053_v47  ;;  %v335_v30 = vadd.f32 %v331_v25, %v309_v11  ;;  %v359_v15 = vadd.f32 %v355_v62, %v333_v13  ;;  %v357_v32 = vmul.f32 %v353_v43, %v345_v0 }
 0x1d2   :  { %1031 = vrot.lane.b32.xlu1 %v1923_v22, %s1824_s18  ;;  %v374_v12 = vsel %vm370_vm7, %v2059_v49, %v2039_v42  ;;  %v360_v31 = vadd.f32 %v356_v21, %v334_v33  ;;  %v371_v47 = vsel %vm370_vm7, %v2045_v44, %v2059_v49  ;;  %v399_v25 = vsel %vm396_vm8, %v2051_v46, %v2065_v51  ;;  %v402_v49 = vld [vmem:[#allocation2 + $0xc0] sm:$0xff] }
 0x1d3   :  { %1055 = vrot.lane.b32.xlu0 %v1915_v18, %s1825_s19  ;;  %v381_v42 = vmul.f32 %v377_v2, %v373_v45  ;;  %v382_v62 = vmul.f32 %v378_v6, %v372_v40  ;;  %v398_v44 = vsel %vm396_vm8, %v2065_v51, %v2057_v48  ;;  %v400_v34 = vsel %vm396_vm8, %v2071_v53, %v2051_v46  ;;  %v428_v21 = vld [vmem:[#allocation2 + $0xe0] sm:$0xff]  ;;  %v455_v2 = vld [vmem:[#allocation2 + $0x108] sm:$0xff] }
 0x1d4   :  { %v2299_v9 = vpop.permute.xlu1 %654  ;;  %v358_v1 = vadd.f32 %v354_v8, %v332_v38  ;;  %v380_v5 = vmul.f32 %v376_v37, %v374_v12  ;;  %v397_v36 = vsel %vm396_vm8, %v2057_v48, %v2071_v53  ;;  %v425_v51 = vsel %vm422_vm9, %v2063_v50, %v2077_v55  ;;  %v431_v8 = vld [vmem:[#allocation2 + $0xf8] sm:$0xff]  ;;  %v456_v37 = vld [vmem:[#allocation2 + $0x110] sm:$0xff] }
 0x1d5   :  { %v2297_v7 = vpop.permute.xlu0 %678  ;;  %v361_v26 = vadd.f32 %v357_v32, %v335_v30  ;;  %v383_v46 = vmul.f32 %v379_v39, %v371_v47  ;;  %v407_v16 = vmul.f32 %v403_v27, %v399_v25  ;;  %v424_v19 = vsel %vm422_vm9, %v2077_v55, %v2069_v52 }
 0x1d6   :  { %1053 = vrot.lane.b32.xlu1 %v1919_v20, %s1825_s19  ;;  %v408_v48 = vmul.f32 %v404_v3, %v398_v44  ;;  %v406_v53 = vmul.f32 %v402_v49, %v400_v34  ;;  %v426_v43 = vsel %vm422_vm9, %v2083_v57, %v2063_v50  ;;  %v385_v0 = vadd.f32 %v381_v42, %v359_v15  ;;  %v457_v3 = vld [vmem:[#allocation2 + $0x118] sm:$0xff]  ;;  %v481_v44 = vld [vmem:[#allocation2 + $0x128] sm:$0xff] }
 0x1d7   :  { %1077 = vrot.lane.b32.xlu0 %v1913_v17, %s1826_s20  ;;  %v386_v11 = vadd.f32 %v382_v62, %v360_v31  ;;  %v409_v13 = vmul.f32 %v405_v24, %v397_v36  ;;  %v433_v55 = vmul.f32 %v429_v41, %v425_v51  ;;  %v384_v33 = vadd.f32 %v380_v5, %v358_v1  ;;  %v454_v31 = vld [vmem:[#allocation2 + $0x100] sm:$0xff]  ;;  %v482_v36 = vld [vmem:[#allocation2 + $0x130] sm:$0xff] }
 0x1d8   :  { %v2336_v28 = vpop.permute.xlu1 %676  ;;  %v434_v38 = vmul.f32 %v430_v35, %v424_v19  ;;  %v423_v50 = vsel %vm422_vm9, %v2069_v52, %v2083_v57  ;;  %v451_v6 = vsel %vm448_vm10, %v2075_v54, %v2089_v59  ;;  %v387_v30 = vadd.f32 %v383_v46, %v361_v26  ;;  %v480_v51 = vld [vmem:[#allocation2 + $0x120] sm:$0xff]  ;;  %v483_v26 = vld [vmem:[#allocation2 + $0x138] sm:$0xff]  ;;  %v508_v35 = vld [vmem:[#allocation2 + $0x150] sm:$0xff] }
 0x1d9   :  { %v2334_v29 = vpop.permute.xlu0 %700  ;;  %v411_v15 = vadd.f32 %v407_v16, %v385_v0  ;;  %v432_v32 = vmul.f32 %v428_v21, %v426_v43  ;;  %v450_v12 = vsel %vm448_vm10, %v2089_v59, %v2081_v56  ;;  %v412_v52 = vadd.f32 %v408_v48, %v386_v11  ;;  %v507_v16 = vld [vmem:[#allocation2 + $0x148] sm:$0xff]  ;;  %v3200_v19 = vld [vmem:[#allocation14_spill] sm:$0xff] }
 0x1da   :  { %1057 = vrot.lane.b32.xlu1 %v1923_v22, %s1825_s19  ;;  %v410_v57 = vadd.f32 %v406_v53, %v384_v33  ;;  %v452_v39 = vsel %vm448_vm10, %v2095_v61, %v2075_v54  ;;  %v413_v47 = vadd.f32 %v409_v13, %v387_v30  ;;  %v435_v59 = vmul.f32 %v431_v8, %v423_v50  ;;  %v3201_v48 = vld [vmem:[#allocation17_spill] sm:$0xff]  ;;  %v506_v33 = vld [vmem:[#allocation2 + $0x140] sm:$0xff] }
 0x1db   :  { %1081 = vrot.lane.b32.xlu0 %v1915_v18, %s1826_s20  ;;  %v437_v27 = vadd.f32 %v433_v55, %v411_v15  ;;  %v459_v25 = vmul.f32 %v455_v2, %v451_v6  ;;  %v438_v42 = vadd.f32 %v434_v38, %v412_v52  ;;  %v460_v62 = vmul.f32 %v456_v37, %v450_v12  ;;  %v3203_v38 = vld [vmem:[#allocation19_spill] sm:$0xff]  ;;  %v533_v52 = vld [vmem:[#allocation2 + $0x168] sm:$0xff] }
 0x1dc   :  { %v2361_v45 = vpop.permute.xlu1 %680  ;;  %v449_v54 = vsel %vm448_vm10, %v2081_v56, %v2095_v61  ;;  %v477_v49 = vsel %vm474_vm11, %v2087_v58, %v2101_v63  ;;  %v436_v5 = vadd.f32 %v432_v32, %v410_v57  ;;  %v458_v24 = vmul.f32 %v454_v31, %v452_v39  ;;  %v3199_v56 = vld [vmem:[#allocation15_spill] sm:$0xff]  ;;  %v534_v57 = vld [vmem:[#allocation2 + $0x170] sm:$0xff]  ;;  %v3205_v39 = vld [vmem:[#allocation21_spill] sm:$0xff] }
 0x1dd   :  { %v2359_v40 = vpop.permute.xlu0 %704  ;;  %v476_v41 = vsel %vm474_vm11, %v2101_v63, %v2093_v60  ;;  %v478_v61 = vsel %vm474_vm11, %v3199_v56, %v2087_v58  ;;  %v475_v46 = vsel %vm474_vm11, %v2093_v60, %v3199_v56  ;;  %v502_v53 = vsel %vm500_vm12, %v3201_v48, %v3200_v19  ;;  %v3202_v63 = vld [vmem:[#allocation13_spill] sm:$0xff]  ;;  %v509_v37 = vld [vmem:[#allocation2 + $0x158] sm:$0xff]  ;;  %v3204_v31 = vld [vmem:[#allocation18_spill] sm:$0xff] }
 0x1de   :  { %1079 = vrot.lane.b32.xlu1 %v1919_v20, %s1826_s20  ;;  %v503_v21 = vsel %vm500_vm12, %v3202_v63, %v3201_v48  ;;  %v439_v58 = vadd.f32 %v435_v59, %v413_v47  ;;  %v463_v60 = vadd.f32 %v459_v25, %v437_v27  ;;  %v461_v43 = vmul.f32 %v457_v3, %v449_v54  ;;  %v3206_v27 = vld [vmem:[#allocation16_spill] sm:$0xff] }
 0x1df   :  { %1103 = vrot.lane.b32.xlu0 %v1913_v17, %s1827_s21  ;;  %v485_v0 = vmul.f32 %v481_v44, %v477_v49  ;;  %v464_v11 = vadd.f32 %v460_v62, %v438_v42  ;;  %v486_v13 = vmul.f32 %v482_v36, %v476_v41  ;;  %v484_v55 = vmul.f32 %v480_v51, %v478_v61  ;;  %v532_v44 = vld [vmem:[#allocation2 + $0x160] sm:$0xff]  ;;  %v535_v49 = vld [vmem:[#allocation2 + $0x178] sm:$0xff] }
 0x1e0   :  { %v2386_v1 = vpop.permute.xlu1 %702  ;;  %v504_v8 = vsel %vm500_vm12, %v3203_v38, %v3202_v63  ;;  %v462_v6 = vadd.f32 %v458_v24, %v436_v5  ;;  %v487_v30 = vmul.f32 %v483_v26, %v475_v46  ;;  %v511_v15 = vmul.f32 %v507_v16, %v503_v21  ;;  %v3207_v5 = vld [vmem:[#allocation23_spill] sm:$0xff]  ;;  %v559_v46 = vld [vmem:[#allocation2 + $0x188] sm:$0xff] }
 0x1e1   :  { %v2384_v34 = vpop.permute.xlu0 %726  ;;  %v512_v32 = vmul.f32 %v508_v35, %v502_v53  ;;  %v501_v12 = vsel %vm500_vm12, %v3200_v19, %v3203_v38  ;;  %v528_v47 = vsel %vm526_vm13, %v3205_v39, %v3204_v31  ;;  %v529_v59 = vsel %vm526_vm13, %v3206_v27, %v3205_v39  ;;  %v3208_v16 = vld [vmem:[#allocation25_spill] sm:$0xff]  ;;  %v3209_v35 = vld [vmem:[#allocation20_spill] sm:$0xff]  ;;  %v3211_v38 = vld [vmem:[#allocation27_spill] sm:$0xff] }
 0x1e2   :  { %1083 = vrot.lane.b32.xlu1 %v1923_v22, %s1826_s20  ;;  %v465_v25 = vadd.f32 %v461_v43, %v439_v58  ;;  %v489_v42 = vadd.f32 %v485_v0, %v463_v60  ;;  %v510_v62 = vmul.f32 %v506_v33, %v504_v8  ;;  %v490_v3 = vadd.f32 %v486_v13, %v464_v11  ;;  %v560_v43 = vld [vmem:[#allocation2 + $0x190] sm:$0xff]  ;;  %v561_v33 = vld [vmem:[#allocation2 + $0x198] sm:$0xff] }
 0x1e3   :  { %1107 = vrot.lane.b32.xlu0 %v1915_v18, %s1827_s21  ;;  %v488_v54 = vadd.f32 %v484_v55, %v462_v6  ;;  %v527_v24 = vsel %vm526_vm13, %v3204_v31, %v3207_v5  ;;  %v530_v36 = vsel %vm526_vm13, %v3207_v5, %v3206_v27  ;;  %v513_v56 = vmul.f32 %v509_v37, %v501_v12  ;;  %v3210_v0 = vld [vmem:[#allocation22_spill] sm:$0xff]  ;;  %v558_v55 = vld [vmem:[#allocation2 + $0x180] sm:$0xff] }
 0x1e4   :  { %v2419_v2 = vpop.permute.xlu1 %706  ;;  %v537_v61 = vmul.f32 %v533_v52, %v529_v59  ;;  %v538_v26 = vmul.f32 %v534_v57, %v528_v47  ;;  %v555_v19 = vsel %vm552_vm14, %v3209_v35, %v3208_v16  ;;  %v491_v48 = vadd.f32 %v487_v30, %v465_v25  ;;  %v585_v30 = vld [vmem:[#allocation2 + $0x1a8] sm:$0xff]  ;;  %v586_v47 = vld [vmem:[#allocation2 + $0x1b0] sm:$0xff] }
 0x1e5   :  { %v2417_v50 = vpop.permute.xlu0 %730  ;;  %v515_v53 = vadd.f32 %v511_v15, %v489_v42  ;;  %v516_v63 = vadd.f32 %v512_v32, %v490_v3  ;;  %v514_v21 = vadd.f32 %v510_v62, %v488_v54  ;;  %v536_v58 = vmul.f32 %v532_v44, %v530_v36  ;;  %v3212_v15 = vld [vmem:[#allocation29_spill] sm:$0xff]  ;;  %v3213_v32 = vld [vmem:[#allocation24_spill] sm:$0xff]  ;;  %v3214_v27 = vld [vmem:[#allocation26_spill] sm:$0xff] }
 0x1e6   :  { %1105 = vrot.lane.b32.xlu1 %v1919_v20, %s1827_s21  ;;  %v539_v60 = vmul.f32 %v535_v49, %v527_v24  ;;  %v554_v11 = vsel %vm552_vm14, %v3208_v16, %v3210_v0  ;;  %v563_v13 = vmul.f32 %v559_v46, %v555_v19  ;;  %v553_v8 = vsel %vm552_vm14, %v3210_v0, %v3211_v38  ;;  %v584_v42 = vld [vmem:[#allocation2 + $0x1a0] sm:$0xff]  ;;  %v587_v62 = vld [vmem:[#allocation2 + $0x1b8] sm:$0xff]  ;;  %v611_v36 = vld [vmem:[#allocation2 + $0x1c8] sm:$0xff] }
 0x1e7   :  { %1129 = vrot.lane.b32.xlu0 %v1913_v17, %s1828_s22  ;;  %v556_v6 = vsel %vm552_vm14, %v3211_v38, %v3209_v35  ;;  %v581_v37 = vsel %vm578_vm15, %v3213_v32, %v3212_v15  ;;  %v517_v57 = vadd.f32 %v513_v56, %v491_v48  ;;  %v541_v31 = vadd.f32 %v537_v61, %v515_v53  ;;  %v3215_v3 = vld [vmem:[#allocation31_spill] sm:$0xff]  ;;  %v3216_v56 = vld [vmem:[#allocation33_spill] sm:$0xff]  ;;  %v3217_v61 = vld [vmem:[#allocation28_spill] sm:$0xff] }
 0x1e8   :  { %v2449_v51 = vpop.permute.xlu1 %728  ;;  %v542_v39 = vadd.f32 %v538_v26, %v516_v63  ;;  %v580_v59 = vsel %vm578_vm15, %v3212_v15, %v3214_v27  ;;  %v564_v25 = vmul.f32 %v560_v43, %v554_v11  ;;  %v579_v54 = vsel %vm578_vm15, %v3214_v27, %v3215_v3  ;;  %v612_v0 = vld [vmem:[#allocation2 + $0x1d0] sm:$0xff]  ;;  %v3219_v38 = vld [vmem:[#allocation35_spill] sm:$0xff] }
 0x1e9   :  { %v2447_v41 = vpop.permute.xlu0 %752  ;;  %v582_v44 = vsel %vm578_vm15, %v3215_v3, %v3213_v32  ;;  %v562_v49 = vmul.f32 %v558_v55, %v556_v6  ;;  %v565_v5 = vmul.f32 %v561_v33, %v553_v8  ;;  %v589_v24 = vmul.f32 %v585_v30, %v581_v37  ;;  %v3218_v11 = vld [vmem:[#allocation30_spill] sm:$0xff]  ;;  %v610_v33 = vld [vmem:[#allocation2 + $0x1c0] sm:$0xff]  ;;  %v613_v15 = vld [vmem:[#allocation2 + $0x1d8] sm:$0xff] }
 0x1ea   :  { %1109 = vrot.lane.b32.xlu1 %v1923_v22, %s1827_s21  ;;  %v607_v26 = vsel %vm604_vm0, %v3217_v61, %v3216_v56  ;;  %v540_v46 = vadd.f32 %v536_v58, %v514_v21  ;;  %v543_v16 = vadd.f32 %v539_v60, %v517_v57  ;;  %v567_v35 = vadd.f32 %v563_v13, %v541_v31  ;;  %v637_v57 = vld [vmem:[#allocation2 + $0x1e8] sm:$0xff]  ;;  %v3220_v31 = vld [vmem:[#allocation32_spill] sm:$0xff]  ;;  %v638_v3 = vld [vmem:[#allocation2 + $0x1f0] sm:$0xff] }
 0x1eb   :  { %1133 = vrot.lane.b32.xlu0 %v1915_v18, %s1828_s22  ;;  %v590_v19 = vmul.f32 %v586_v47, %v580_v59  ;;  %v588_v63 = vmul.f32 %v584_v42, %v582_v44  ;;  %v591_v43 = vmul.f32 %v587_v62, %v579_v54  ;;  %v606_v55 = vsel %vm604_vm0, %v3216_v56, %v3218_v11  ;;  %v3221_v54 = vld [vmem:[#allocation34_spill] sm:$0xff] }
 0x1ec   :  { %v2478_v52 = vpop.permute.xlu1 %732  ;;  %v608_v21 = vsel %vm604_vm0, %v3219_v38, %v3217_v61  ;;  %v615_v58 = vmul.f32 %v611_v36, %v607_v26  ;;  %v568_v60 = vadd.f32 %v564_v25, %v542_v39  ;;  %v566_v13 = vadd.f32 %v562_v49, %v540_v46  ;;  %v636_v49 = vld [vmem:[#allocation2 + $0x1e0] sm:$0xff]  ;;  %v639_v61 = vld [vmem:[#allocation2 + $0x1f8] sm:$0xff]  ;;  %v663_v26 = vld [vmem:[#allocation2 + $0x208] sm:$0xff] }
 0x1ed   :  { %v2476_v12 = vpop.permute.xlu0 %756  ;;  %v569_v8 = vadd.f32 %v565_v5, %v543_v16  ;;  %v593_v6 = vadd.f32 %v589_v24, %v567_v35  ;;  %v616_v30 = vmul.f32 %v612_v0, %v606_v55  ;;  %v605_v32 = vsel %vm604_vm0, %v3218_v11, %v3219_v38  ;;  %v3222_v5 = vld [vmem:[#allocation38_spill] sm:$0xff]  ;;  %v3223_v46 = vld [vmem:[#allocation36_spill] sm:$0xff] }
 0x1ee   :  { %1131 = vrot.lane.b32.xlu1 %v1919_v20, %s1828_s22  ;;  %v614_v37 = vmul.f32 %v610_v33, %v608_v21  ;;  %v633_v47 = vsel %vm630_vm1, %v3220_v31, %v2215_v4  ;;  %v594_v59 = vadd.f32 %v590_v19, %v568_v60  ;;  %v592_v25 = vadd.f32 %v588_v63, %v566_v13  ;;  %v664_v63 = vld [vmem:[#allocation2 + $0x210] sm:$0xff]  ;;  %v662_v11 = vld [vmem:[#allocation2 + $0x200] sm:$0xff]  ;;  %v665_v60 = vld [vmem:[#allocation2 + $0x218] sm:$0xff] }
 0x1ef   :  { %1155 = vrot.lane.b32.xlu0 %v1913_v17, %s1829_s23  ;;  %v595_v42 = vadd.f32 %v591_v43, %v569_v8  ;;  %v619_v62 = vadd.f32 %v615_v58, %v593_v6  ;;  %v632_v44 = vsel %vm630_vm1, %v2215_v4, %v3221_v54  ;;  %v634_v24 = vsel %vm630_vm1, %v3222_v5, %v3220_v31  ;;  %v3224_v43 = vld [vmem:[#allocation37_spill] sm:$0xff] }
 0x1f0   :  { %v2503_v53 = vpop.permute.xlu1 %754  ;;  %v617_v36 = vmul.f32 %v613_v15, %v605_v32  ;;  %v641_v56 = vmul.f32 %v637_v57, %v633_v47  ;;  %v631_v4 = vsel %vm630_vm1, %v3221_v54, %v3222_v5  ;;  %v659_v16 = vsel %vm656_vm2, %v3223_v46, %v2273_v10  ;;  %v689_v8 = vld [vmem:[#allocation2 + $0x228] sm:$0xff]  ;;  %v690_v15 = vld [vmem:[#allocation2 + $0x230] sm:$0xff] }
 0x1f1   :  { %v2501_v48 = vpop.permute.xlu0 %778  ;;  %v620_v35 = vadd.f32 %v616_v30, %v594_v59  ;;  %v618_v19 = vadd.f32 %v614_v37, %v592_v25  ;;  %v658_v0 = vsel %vm656_vm2, %v2273_v10, %v3224_v43  ;;  %v660_v55 = vsel %vm656_vm2, %v2299_v9, %v3223_v46  ;;  %v688_v25 = vld [vmem:[#allocation2 + $0x220] sm:$0xff] }
 0x1f2   :  { %1135 = vrot.lane.b32.xlu1 %v1923_v22, %s1828_s22  ;;  %v642_v21 = vmul.f32 %v638_v3, %v632_v44  ;;  %v640_v58 = vmul.f32 %v636_v49, %v634_v24  ;;  %v657_v13 = vsel %vm656_vm2, %v3224_v43, %v2299_v9  ;;  %v685_v10 = vsel %vm682_vm3, %v2271_v14, %v2336_v28  ;;  %v691_v3 = vld [vmem:[#allocation2 + $0x238] sm:$0xff] }
 0x1f3   :  { %1159 = vrot.lane.b32.xlu0 %v1915_v18, %s1829_s23  ;;  %v643_v6 = vmul.f32 %v639_v61, %v631_v4  ;;  %v667_v30 = vmul.f32 %v663_v26, %v659_v16  ;;  %v684_v32 = vsel %vm682_vm3, %v2336_v28, %v2297_v7  ;;  %v621_v9 = vadd.f32 %v617_v36, %v595_v42  ;;  %v714_v4 = vld [vmem:[#allocation2 + $0x240] sm:$0xff] }
 0x1f4   :  { %v2528_v39 = vpop.permute.xlu1 %758  ;;  %v645_v37 = vadd.f32 %v641_v56, %v619_v62  ;;  %v668_v57 = vmul.f32 %v664_v63, %v658_v0  ;;  %v666_v31 = vmul.f32 %v662_v11, %v660_v55  ;;  %v669_v47 = vmul.f32 %v665_v60, %v657_v13  ;;  %v715_v56 = vld [vmem:[#allocation2 + $0x248] sm:$0xff] }
 0x1f5   :  { %v2526_v27 = vpop.permute.xlu0 %782  ;;  %v693_v59 = vmul.f32 %v689_v8, %v685_v10  ;;  %v683_v28 = vsel %vm682_vm3, %v2297_v7, %v2361_v45  ;;  %v686_v54 = vsel %vm682_vm3, %v2361_v45, %v2271_v14  ;;  %v646_v62 = vadd.f32 %v642_v21, %v620_v35  ;;  %v717_v21 = vld [vmem:[#allocation2 + $0x258] sm:$0xff]  ;;  %v742_v8 = vld [vmem:[#allocation2 + $0x270] sm:$0xff] }
 0x1f6   :  { %1157 = vrot.lane.b32.xlu1 %v1919_v20, %s1829_s23  ;;  %v644_v49 = vadd.f32 %v640_v58, %v618_v19  ;;  %v694_v5 = vmul.f32 %v690_v15, %v684_v32  ;;  %vm734_vm5 = vcmp.lt.s32.totalorder %v2160_v23, 14  ;;  %v647_v24 = vadd.f32 %v643_v6, %v621_v9  ;;  %v716_v19 = vld [vmem:[#allocation2 + $0x250] sm:$0xff]  ;;  %v740_v58 = vld [vmem:[#allocation2 + $0x260] sm:$0xff] }
 0x1f7   :  { %1181 = vrot.lane.b32.xlu0 %v1913_v17, %s1830_s24  ;;  %v671_v36 = vadd.f32 %v667_v30, %v645_v37  ;;  %v711_v7 = vsel %vm708_vm4, %v2334_v29, %v2386_v1  ;;  %vm760_vm6 = vcmp.lt.s32.totalorder %v2160_v23, 13  ;;  %v672_v14 = vadd.f32 %v668_v57, %v646_v62  ;;  %v766_v15 = vld [vmem:[#allocation2 + $0x280] sm:$0xff]  ;;  %v743_v37 = vld [vmem:[#allocation2 + $0x278] sm:$0xff]  ;;  %v767_v57 = vld [vmem:[#allocation2 + $0x288] sm:$0xff] }
 0x1f8   :  { %v2561_v38 = vpop.permute.xlu1 %780  ;;  %v692_v45 = vmul.f32 %v688_v25, %v686_v54  ;;  %v695_v61 = vmul.f32 %v691_v3, %v683_v28  ;;  %v712_v26 = vsel %vm708_vm4, %v2419_v2, %v2334_v29  ;;  %v670_v46 = vadd.f32 %v666_v31, %v644_v49  ;;  %v768_v28 = vld [vmem:[#allocation2 + $0x290] sm:$0xff] }
 0x1f9   :  { %v2559_v33 = vpop.permute.xlu0 %804  ;;  %v673_v16 = vadd.f32 %v669_v47, %v647_v24  ;;  %v697_v35 = vadd.f32 %v693_v59, %v671_v36  ;;  %v710_v63 = vsel %vm708_vm4, %v2386_v1, %v2359_v40  ;;  %v698_v11 = vadd.f32 %v694_v5, %v672_v14  ;;  %v741_v1 = vld [vmem:[#allocation2 + $0x268] sm:$0xff]  ;;  %v818_v36 = vld [vmem:[#allocation2 + $0x2c0] sm:$0xff] }
 0x1fa   :  { %1161 = vrot.lane.b32.xlu1 %v1923_v22, %s1829_s23  ;;  %v719_v55 = vmul.f32 %v715_v56, %v711_v7  ;;  %v709_v29 = vsel %vm708_vm4, %v2359_v40, %v2419_v2  ;;  %v738_v60 = vsel %vm734_vm5, %v2478_v52, %v2384_v34  ;;  %v718_v13 = vmul.f32 %v714_v4, %v712_v26 }
 0x1fb   :  { %1185 = vrot.lane.b32.xlu0 %v1915_v18, %s1830_s24  ;;  %v736_v10 = vsel %vm734_vm5, %v2449_v51, %v2417_v50  ;;  %v737_v6 = vsel %vm734_vm5, %v2384_v34, %v2449_v51  ;;  %vm786_vm7 = vcmp.lt.s32.totalorder %v2160_v23, 3  ;;  %v696_v40 = vadd.f32 %v692_v45, %v670_v46  ;;  %v793_v45 = vld [vmem:[#allocation2 + $0x2a8] sm:$0xff] }
 0x1fc   :  { %v2590_v42 = vpop.permute.xlu1 %784  ;;  %v699_v2 = vadd.f32 %v695_v61, %v673_v16  ;;  %v720_v30 = vmul.f32 %v716_v19, %v710_v63  ;;  %v764_v32 = vsel %vm760_vm6, %v2528_v39, %v2447_v41  ;;  %v721_v9 = vmul.f32 %v717_v21, %v709_v29 }
 0x1fd   :  { %v2588_v44 = vpop.permute.xlu0 %808  ;;  %v735_v34 = vsel %vm734_vm5, %v2417_v50, %v2478_v52  ;;  %v744_v51 = vmul.f32 %v740_v58, %v738_v60  ;;  %v763_v31 = vsel %vm760_vm6, %v2447_v41, %v2503_v53  ;;  %v745_v25 = vmul.f32 %v741_v1, %v737_v6  ;;  %v792_v50 = vld [vmem:[#allocation2 + $0x2a0] sm:$0xff]  ;;  %v769_v58 = vld [vmem:[#allocation2 + $0x298] sm:$0xff] }
 0x1fe   :  { %1183 = vrot.lane.b32.xlu1 %v1919_v20, %s1830_s24  ;;  %v746_v3 = vmul.f32 %v742_v8, %v736_v10  ;;  %v762_v54 = vsel %vm760_vm6, %v2503_v53, %v2476_v12  ;;  %v790_v52 = vsel %vm786_vm7, %v2590_v42, %v2501_v48  ;;  %v723_v62 = vadd.f32 %v719_v55, %v697_v35  ;;  %v844_v1 = vld [vmem:[#allocation2 + $0x2e0] sm:$0xff]  ;;  %v794_v10 = vld [vmem:[#allocation2 + $0x2b0] sm:$0xff] }
 0x1ff   :  { %1207 = vrot.lane.b32.xlu0 %v1913_v17, %s1831_s25  ;;  %v722_v41 = vadd.f32 %v718_v13, %v696_v40  ;;  %v770_v49 = vmul.f32 %v766_v15, %v764_v32  ;;  %vm812_vm8 = vcmp.lt.s32.totalorder %v2160_v23, 2  ;;  %v724_v5 = vadd.f32 %v720_v30, %v698_v11  ;;  %v819_v11 = vld [vmem:[#allocation2 + $0x2c8] sm:$0xff]  ;;  %v795_v32 = vld [vmem:[#allocation2 + $0x2b8] sm:$0xff] }
 0x200   :  { %v2612_v0 = vpop.permute.xlu1 %806  ;;  %v747_v53 = vmul.f32 %v743_v37, %v735_v34  ;;  %v771_v24 = vmul.f32 %v767_v57, %v763_v31  ;;  %v772_v14 = vmul.f32 %v768_v28, %v762_v54  ;;  %v789_v61 = vsel %vm786_vm7, %v2501_v48, %v2561_v38  ;;  %v845_v40 = vld [vmem:[#allocation2 + $0x2e8] sm:$0xff]  ;;  %v846_v54 = vld [vmem:[#allocation2 + $0x2f0] sm:$0xff] }
 0x201   :  { %v2610_v43 = vpop.permute.xlu0 %830  ;;  %v748_v7 = vadd.f32 %v744_v51, %v722_v41  ;;  %v796_v4 = vmul.f32 %v792_v50, %v790_v52  ;;  %v725_v16 = vadd.f32 %v721_v9, %v699_v2  ;;  %v749_v35 = vadd.f32 %v745_v25, %v723_v62  ;;  %v857_v25 = vld [vmem:[#allocation2 + $0x300] sm:$0xff]  ;;  %v858_v41 = vld [vmem:[#allocation2 + $0x308] sm:$0xff] }
 0x202   :  { %1187 = vrot.lane.b32.xlu1 %v1923_v22, %s1830_s24  ;;  %v750_v19 = vadd.f32 %v746_v3, %v724_v5  ;;  %vm838_vm9 = vcmp.lt.s32.totalorder %v2160_v23, 1  ;;  %v815_v55 = vsel %vm812_vm8, %v2559_v33, %v2612_v0  ;;  %v761_v60 = vsel %vm760_vm6, %v2476_v12, %v2528_v39  ;;  %v820_v39 = vld [vmem:[#allocation2 + $0x2d0] sm:$0xff] }
 0x203   :  { %1211 = vrot.lane.b32.xlu0 %v1915_v18, %s1831_s25  ;;  %v774_v63 = vadd.f32 %v770_v49, %v748_v7  ;;  %v751_v48 = vadd.f32 %v747_v53, %v725_v16  ;;  %v775_v29 = vadd.f32 %v771_v24, %v749_v35  ;;  %v797_v13 = vmul.f32 %v793_v45, %v789_v61  ;;  %v847_v53 = vld [vmem:[#allocation2 + $0x2f8] sm:$0xff] }
 0x204   :  { %v2649_v59 = vpop.permute.xlu1 %810  ;;  %v776_v8 = vadd.f32 %v772_v14, %v750_v19  ;;  %v787_v12 = vsel %vm786_vm7, %v2526_v27, %v2590_v42  ;;  %v823_v9 = vmul.f32 %v819_v11, %v815_v55  ;;  %v773_v34 = vmul.f32 %v769_v58, %v761_v60  ;;  %v884_v14 = vld [vmem:[#allocation2 + $0x328] sm:$0xff]  ;;  %v860_v58 = vld [vmem:[#allocation2 + $0x318] sm:$0xff] }
 0x205   :  { %v2647_v47 = vpop.permute.xlu0 %834  ;;  %v816_v56 = vsel %vm812_vm8, %v2649_v59, %v2559_v33  ;;  %v788_v33 = vsel %vm786_vm7, %v2561_v38, %v2526_v27  ;;  %v800_v6 = vadd.f32 %v796_v4, %v774_v63  ;;  %v814_v38 = vsel %vm812_vm8, %v2612_v0, %v2588_v44  ;;  %v821_v0 = vld [vmem:[#allocation2 + $0x2d8] sm:$0xff] }
 0x206   :  { %1209 = vrot.lane.b32.xlu1 %v1919_v20, %s1831_s25  ;;  %v822_v21 = vmul.f32 %v818_v36, %v816_v56  ;;  %vm877_vm10 = vcmp.lt.s32.totalorder %v2160_v23, 127  ;;  %v798_v27 = vmul.f32 %v794_v10, %v788_v33  ;;  %v801_v42 = vadd.f32 %v797_v13, %v775_v29  ;;  %v859_v29 = vld [vmem:[#allocation2 + $0x310] sm:$0xff] }
 0x207   :  { %1233 = vrot.lane.b32.xlu0 %v1913_v17, %s1832_s26  ;;  %v799_v3 = vmul.f32 %v795_v32, %v787_v12  ;;  %v824_v28 = vmul.f32 %v820_v39, %v814_v38  ;;  %v777_v56 = vadd.f32 %v773_v34, %v751_v48  ;;  %v861_v45 = vmul.f32 %v857_v25, %v1913_v17 }
 0x208   :  { %v833_v46 = vpop.permute.xlu1 %832  ;;  %v826_v51 = vadd.f32 %v822_v21, %v800_v6  ;;  %v827_v5 = vadd.f32 %v823_v9, %v801_v42  ;;  %vm903_vm11 = vcmp.lt.s32.totalorder %v2160_v23, 126  ;;  %v886_v6 = vld [vmem:[#allocation2 + $0x338] sm:$0xff]  ;;  %v864_v32 = vmul.f32 %v860_v58, %v1923_v22 }
 0x209   :  { %v2672_v26 = vpop.permute.xlu0 %869  ;;  %v841_v2 = vsel %vm838_vm9, %v2610_v43, %v833_v46  ;;  %v840_v50 = vsel %vm838_vm9, %v833_v46, %v2647_v47  ;;  %v862_v46 = vmul.f32 %v858_v41, %v1919_v20  ;;  %v803_v16 = vadd.f32 %v799_v3, %v777_v56 }
 0x20a   :  { %1213 = vrot.lane.b32.xlu1 %v1923_v22, %s1831_s25  ;;  %v849_v31 = vmul.f32 %v845_v40, %v841_v2  ;;  %v850_v61 = vmul.f32 %v846_v54, %v840_v50  ;;  %v909_v40 = vld [vmem:[#allocation2 + $0x340] sm:$0xff]  ;;  %v910_v2 = vld [vmem:[#allocation2 + $0x348] sm:$0xff]  ;;  %vm929_vm12 = vcmp.lt.s32.totalorder %v2160_v23, 125  ;;  %vm955_vm13 = vcmp.lt.s32.totalorder %v2160_v23, 115 }
 0x20b   :  { %1237 = vrot.lane.b32.xlu0 %v1915_v18, %s1832_s26  ;;  %vm981_vm14 = vcmp.lt.s32.totalorder %v2160_v23, 114  ;;  %vm1007_vm15 = vcmp.lt.s32.totalorder %v2160_v23, 113  ;;  %vm1033_vm0 = vcmp.lt.s32.totalorder %v2160_v23, 112  ;;  %vm1059_vm1 = vcmp.lt.s32.totalorder %v2160_v23, 111 }
 0x20c   :  { %v837_v15 = vpop.permute.xlu1 %836  ;;  %v853_v4 = vadd.f32 %v849_v31, %v827_v5  ;;  %vm1085_vm2 = vcmp.lt.s32.totalorder %v2160_v23, 110  ;;  %vm1111_vm3 = vcmp.lt.s32.totalorder %v2160_v23, 109  ;;  %vm1137_vm4 = vcmp.lt.s32.totalorder %v2160_v23, 99 }
 0x20d   :  { %v874_v30 = vpop.permute.xlu0 %873  ;;  %v842_v37 = vsel %vm838_vm9, %v837_v15, %v2610_v43  ;;  %v813_v43 = vsel %vm812_vm8, %v2588_v44, %v2649_v59  ;;  %v839_v44 = vsel %vm838_vm9, %v2647_v47, %v837_v15  ;;  %v883_v59 = vld [vmem:[#allocation2 + $0x320] sm:$0xff]  ;;  %v802_v47 = vadd.f32 %v798_v27, %v776_v8  ;;  %v885_v8 = vld [vmem:[#allocation2 + $0x330] sm:$0xff] }
 0x20e   :  { %v848_v57 = vmul.f32 %v844_v1, %v842_v37  ;;  %1235 = vrot.lane.b32.xlu1 %v1919_v20, %s1832_s26  ;;  %v825_v7 = vmul.f32 %v821_v0, %v813_v43  ;;  %v851_v35 = vmul.f32 %v847_v53, %v839_v44  ;;  %v866_v33 = vadd.f32 %v862_v46, %v853_v4  ;;  %v911_v0 = vld [vmem:[#allocation2 + $0x350] sm:$0xff]  ;;  %v912_v43 = vld [vmem:[#allocation2 + $0x358] sm:$0xff]  ;;  %v935_v44 = vld [vmem:[#allocation2 + $0x360] sm:$0xff] }
 0x20f   :  { %1259 = vrot.lane.b32.xlu0 %v1913_v17, %s1833_s27  ;;  %v828_v21 = vadd.f32 %v824_v28, %v802_v47  ;;  %v938_v4 = vld [vmem:[#allocation2 + $0x378] sm:$0xff]  ;;  %vm1163_vm5 = vcmp.lt.s32.totalorder %v2160_v23, 98  ;;  %vm1189_vm6 = vcmp.lt.s32.totalorder %v2160_v23, 97  ;;  %vm1215_vm7 = vcmp.lt.s32.totalorder %v2160_v23, 96 }
 0x210   :  { %v852_v52 = vadd.f32 %v848_v57, %v826_v51  ;;  %v872_v49 = vpop.permute.xlu1 %871  ;;  %v829_v1 = vadd.f32 %v825_v7, %v803_v16  ;;  %vm1241_vm8 = vcmp.lt.s32.totalorder %v2160_v23, 95  ;;  %vm1267_vm9 = vcmp.lt.s32.totalorder %v2160_v23, 94 }
 0x211   :  { %v2717_v62 = vpop.permute.xlu0 %895  ;;  %v879_v24 = vsel %vm877_vm10, %v872_v49, %v874_v30  ;;  %v880_v36 = vsel %vm877_vm10, %v2672_v26, %v872_v49  ;;  %v854_v10 = vadd.f32 %v850_v61, %v828_v21  ;;  %v937_v61 = vld [vmem:[#allocation2 + $0x370] sm:$0xff] }
 0x212   :  { %1239 = vrot.lane.b32.xlu1 %v1923_v22, %s1832_s26  ;;  %v865_v19 = vadd.f32 %v861_v45, %v852_v52  ;;  %v887_v63 = vmul.f32 %v883_v59, %v880_v36  ;;  %v888_v48 = vmul.f32 %v884_v14, %v879_v24  ;;  %v936_v59 = vld [vmem:[#allocation2 + $0x368] sm:$0xff] }
 0x213   :  { %1263 = vrot.lane.b32.xlu0 %v1915_v18, %s1833_s27 }
 0x214   :  { %v876_v55 = vpop.permute.xlu1 %875  ;;  %v891_v15 = vadd.f32 %v887_v63, %v865_v19  ;;  %v892_v38 = vadd.f32 %v888_v48, %v866_v33  ;;  %v961_v48 = vld [vmem:[#allocation2 + $0x380] sm:$0xff] }
 0x215   :  { %v900_v11 = vpop.permute.xlu0 %899  ;;  %v878_v60 = vsel %vm877_vm10, %v874_v30, %v876_v55  ;;  %v881_v13 = vsel %vm877_vm10, %v876_v55, %v2672_v26  ;;  %v855_v30 = vadd.f32 %v851_v35, %v829_v1  ;;  %v863_v26 = vmul.f32 %v859_v29, %v1915_v18  ;;  %v962_v29 = vld [vmem:[#allocation2 + $0x388] sm:$0xff] }
 0x216   :  { %1261 = vrot.lane.b32.xlu1 %v1919_v20, %s1833_s27  ;;  %v889_v9 = vmul.f32 %v885_v8, %v878_v60  ;;  %v890_v51 = vmul.f32 %v886_v6, %v881_v13  ;;  %vm1293_vm10 = vcmp.lt.s32.totalorder %v2160_v23, 93 }
 0x217   :  { %1285 = vrot.lane.b32.xlu0 %v1913_v17, %s1834_s29  ;;  %v867_v42 = vadd.f32 %v863_v26, %v854_v10  ;;  %v868_v31 = vadd.f32 %v864_v32, %v855_v30 }
 0x218   :  { %v898_v39 = vpop.permute.xlu1 %897 }
 0x219   :  { %v922_v12 = vpop.permute.xlu0 %921  ;;  %v905_v37 = vsel %vm903_vm11, %v898_v39, %v900_v11  ;;  %v906_v34 = vsel %vm903_vm11, %v2717_v62, %v898_v39  ;;  %v893_v50 = vadd.f32 %v889_v9, %v867_v42  ;;  %v894_v49 = vadd.f32 %v890_v51, %v868_v31 }
 0x21a   :  { %v913_v57 = vmul.f32 %v909_v40, %v906_v34  ;;  %v914_v27 = vmul.f32 %v910_v2, %v905_v37  ;;  %1265 = vrot.lane.b32.xlu1 %v1923_v22, %s1833_s27  ;;  %v963_v40 = vld [vmem:[#allocation2 + $0x390] sm:$0xff]  ;;  %v964_v2 = vld [vmem:[#allocation2 + $0x398] sm:$0xff]  ;;  %v987_v37 = vld [vmem:[#allocation2 + $0x3a0] sm:$0xff] }
 0x21b   :  { %1289 = vrot.lane.b32.xlu0 %v1915_v18, %s1834_s29  ;;  %v988_v34 = vld [vmem:[#allocation2 + $0x3a8] sm:$0xff] }
 0x21c   :  { %v917_v25 = vadd.f32 %v913_v57, %v891_v15  ;;  %v918_v3 = vadd.f32 %v914_v27, %v892_v38  ;;  %v902_v54 = vpop.permute.xlu1 %901 }
 0x21d   :  { %v926_v28 = vpop.permute.xlu0 %925  ;;  %v904_v52 = vsel %vm903_vm11, %v900_v11, %v902_v54  ;;  %v907_v41 = vsel %vm903_vm11, %v902_v54, %v2717_v62  ;;  %vm1319_vm11 = vcmp.lt.s32.totalorder %v2160_v23, 83 }
 0x21e   :  { %v915_v5 = vmul.f32 %v911_v0, %v904_v52  ;;  %v916_v53 = vmul.f32 %v912_v43, %v907_v41  ;;  %1287 = vrot.lane.b32.xlu1 %v1919_v20, %s1834_s29 }
 0x21f   :  { %1311 = vrot.lane.b32.xlu0 %v1913_v17, %s1835_s30 }
 0x220   :  { %v919_v24 = vadd.f32 %v915_v5, %v893_v50  ;;  %v920_v36 = vadd.f32 %v916_v53, %v894_v49  ;;  %v924_v7 = vpop.permute.xlu1 %923 }
 0x221   :  { %v948_v56 = vpop.permute.xlu0 %947  ;;  %v931_v62 = vsel %vm929_vm12, %v924_v7, %v926_v28  ;;  %v932_v14 = vsel %vm929_vm12, %v922_v12, %v924_v7 }
 0x222   :  { %v939_v45 = vmul.f32 %v935_v44, %v932_v14  ;;  %v940_v47 = vmul.f32 %v936_v59, %v931_v62  ;;  %1291 = vrot.lane.b32.xlu1 %v1923_v22, %s1834_s29  ;;  %v1013_v59 = vld [vmem:[#allocation2 + $0x3c0] sm:$0xff] }
 0x223   :  { %1315 = vrot.lane.b32.xlu0 %v1915_v18, %s1835_s30 }
 0x224   :  { %v943_v46 = vadd.f32 %v939_v45, %v917_v25  ;;  %v944_v16 = vadd.f32 %v940_v47, %v918_v3  ;;  %v928_v19 = vpop.permute.xlu1 %927  ;;  %v989_v3 = vld [vmem:[#allocation2 + $0x3b0] sm:$0xff] }
 0x225   :  { %v952_v35 = vpop.permute.xlu0 %951  ;;  %v930_v63 = vsel %vm929_vm12, %v926_v28, %v928_v19  ;;  %v933_v11 = vsel %vm929_vm12, %v928_v19, %v922_v12  ;;  %v990_v28 = vld [vmem:[#allocation2 + $0x3b8] sm:$0xff]  ;;  %vm1345_vm12 = vcmp.lt.s32.totalorder %v2160_v23, 82 }
 0x226   :  { %v941_v55 = vmul.f32 %v937_v61, %v930_v63  ;;  %v942_v21 = vmul.f32 %v938_v4, %v933_v11  ;;  %1313 = vrot.lane.b32.xlu1 %v1919_v20, %s1835_s30  ;;  %v1015_v4 = vld [vmem:[#allocation2 + $0x3d0] sm:$0xff] }
 0x227   :  { %1337 = vrot.lane.b32.xlu0 %v1913_v17, %s1836_s28 }
 0x228   :  { %v945_v58 = vadd.f32 %v941_v55, %v919_v24  ;;  %v946_v60 = vadd.f32 %v942_v21, %v920_v36  ;;  %v950_v1 = vpop.permute.xlu1 %949  ;;  %v1014_v24 = vld [vmem:[#allocation2 + $0x3c8] sm:$0xff] }
 0x229   :  { %v974_v13 = vpop.permute.xlu0 %973  ;;  %v957_v8 = vsel %vm955_vm13, %v950_v1, %v952_v35  ;;  %v958_v10 = vsel %vm955_vm13, %v948_v56, %v950_v1 }
 0x22a   :  { %v965_v33 = vmul.f32 %v961_v48, %v958_v10  ;;  %v966_v6 = vmul.f32 %v962_v29, %v957_v8  ;;  %1317 = vrot.lane.b32.xlu1 %v1923_v22, %s1835_s30  ;;  %v1039_v29 = vld [vmem:[#allocation2 + $0x3e0] sm:$0xff] }
 0x22b   :  { %1341 = vrot.lane.b32.xlu0 %v1915_v18, %s1836_s28 }
 0x22c   :  { %v969_v30 = vadd.f32 %v965_v33, %v943_v46  ;;  %v970_v15 = vadd.f32 %v966_v6, %v944_v16  ;;  %v954_v32 = vpop.permute.xlu1 %953  ;;  %v1016_v46 = vld [vmem:[#allocation2 + $0x3d8] sm:$0xff] }
 0x22d   :  { %v978_v26 = vpop.permute.xlu0 %977  ;;  %v956_v12 = vsel %vm955_vm13, %v952_v35, %v954_v32  ;;  %v959_v39 = vsel %vm955_vm13, %v954_v32, %v948_v56  ;;  %vm1371_vm13 = vcmp.lt.s32.totalorder %v2160_v23, 81 }
 0x22e   :  { %v967_v38 = vmul.f32 %v963_v40, %v956_v12  ;;  %v968_v9 = vmul.f32 %v964_v2, %v959_v39  ;;  %1339 = vrot.lane.b32.xlu1 %v1919_v20, %s1836_s28  ;;  %v1041_v2 = vld [vmem:[#allocation2 + $0x3f0] sm:$0xff] }
 0x22f   :  { %1363 = vrot.lane.b32.xlu0 %v1913_v17, %s1837_s8 }
 0x230   :  { %v971_v51 = vadd.f32 %v967_v38, %v945_v58  ;;  %v972_v57 = vadd.f32 %v968_v9, %v946_v60  ;;  %v976_v42 = vpop.permute.xlu1 %975  ;;  %v1040_v58 = vld [vmem:[#allocation2 + $0x3e8] sm:$0xff] }
 0x231   :  { %v1000_v27 = vpop.permute.xlu0 %999  ;;  %v983_v0 = vsel %vm981_vm14, %v976_v42, %v978_v26  ;;  %v984_v43 = vsel %vm981_vm14, %v974_v13, %v976_v42 }
 0x232   :  { %v991_v31 = vmul.f32 %v987_v37, %v984_v43  ;;  %v992_v25 = vmul.f32 %v988_v34, %v983_v0  ;;  %1343 = vrot.lane.b32.xlu1 %v1923_v22, %s1836_s28  ;;  %v1065_v34 = vld [vmem:[#allocation2 + $0x400] sm:$0xff] }
 0x233   :  { %1367 = vrot.lane.b32.xlu0 %v1915_v18, %s1837_s8 }
 0x234   :  { %v995_v54 = vadd.f32 %v991_v31, %v969_v30  ;;  %v996_v50 = vadd.f32 %v992_v25, %v970_v15  ;;  %v980_v41 = vpop.permute.xlu1 %979  ;;  %v1042_v30 = vld [vmem:[#allocation2 + $0x3f8] sm:$0xff] }
 0x235   :  { %v1004_v52 = vpop.permute.xlu0 %1003  ;;  %v982_v49 = vsel %vm981_vm14, %v978_v26, %v980_v41  ;;  %v985_v5 = vsel %vm981_vm14, %v980_v41, %v974_v13  ;;  %vm1397_vm14 = vcmp.lt.s32.totalorder %v2160_v23, 80 }
 0x236   :  { %v993_v53 = vmul.f32 %v989_v3, %v982_v49  ;;  %v994_v44 = vmul.f32 %v990_v28, %v985_v5  ;;  %1365 = vrot.lane.b32.xlu1 %v1919_v20, %s1837_s8  ;;  %v1067_v28 = vld [vmem:[#allocation2 + $0x410] sm:$0xff] }
 0x237   :  { %1389 = vrot.lane.b32.xlu0 %v1913_v17, %s1838_s9 }
 0x238   :  { %v997_v36 = vadd.f32 %v993_v53, %v971_v51  ;;  %v998_v56 = vadd.f32 %v994_v44, %v972_v57  ;;  %v1002_v62 = vpop.permute.xlu1 %1001  ;;  %v1066_v51 = vld [vmem:[#allocation2 + $0x408] sm:$0xff] }
 0x239   :  { %v1026_v7 = vpop.permute.xlu0 %1025  ;;  %v1009_v14 = vsel %vm1007_vm15, %v1002_v62, %v1004_v52  ;;  %v1010_v45 = vsel %vm1007_vm15, %v1000_v27, %v1002_v62 }
 0x23a   :  { %v1017_v47 = vmul.f32 %v1013_v59, %v1010_v45  ;;  %v1018_v61 = vmul.f32 %v1014_v24, %v1009_v14  ;;  %1369 = vrot.lane.b32.xlu1 %v1923_v22, %s1837_s8  ;;  %v1091_v24 = vld [vmem:[#allocation2 + $0x420] sm:$0xff] }
 0x23b   :  { %1393 = vrot.lane.b32.xlu0 %v1915_v18, %s1838_s9 }
 0x23c   :  { %v1021_v16 = vadd.f32 %v1017_v47, %v995_v54  ;;  %v1022_v35 = vadd.f32 %v1018_v61, %v996_v50  ;;  %v1006_v63 = vpop.permute.xlu1 %1005  ;;  %v1068_v54 = vld [vmem:[#allocation2 + $0x418] sm:$0xff] }
 0x23d   :  { %v1030_v19 = vpop.permute.xlu0 %1029  ;;  %v1008_v11 = vsel %vm1007_vm15, %v1004_v52, %v1006_v63  ;;  %v1011_v55 = vsel %vm1007_vm15, %v1006_v63, %v1000_v27  ;;  %vm1423_vm15 = vcmp.lt.s32.totalorder %v2160_v23, 79 }
 0x23e   :  { %v1019_v21 = vmul.f32 %v1015_v4, %v1008_v11  ;;  %v1020_v48 = vmul.f32 %v1016_v46, %v1011_v55  ;;  %1391 = vrot.lane.b32.xlu1 %v1919_v20, %s1838_s9  ;;  %v1094_v46 = vld [vmem:[#allocation2 + $0x438] sm:$0xff] }
 0x23f   :  { %1415 = vrot.lane.b32.xlu0 %v1913_v17, %s1839_s10 }
 0x240   :  { %v1023_v60 = vadd.f32 %v1019_v21, %v997_v36  ;;  %v1024_v13 = vadd.f32 %v1020_v48, %v998_v56  ;;  %v1028_v8 = vpop.permute.xlu1 %1027  ;;  %v1092_v36 = vld [vmem:[#allocation2 + $0x428] sm:$0xff] }
 0x241   :  { %v1052_v1 = vpop.permute.xlu0 %1051  ;;  %v1035_v10 = vsel %vm1033_vm0, %v1028_v8, %v1030_v19  ;;  %v1036_v33 = vsel %vm1033_vm0, %v1026_v7, %v1028_v8 }
 0x242   :  { %v1043_v6 = vmul.f32 %v1039_v29, %v1036_v33  ;;  %v1044_v40 = vmul.f32 %v1040_v58, %v1035_v10  ;;  %1395 = vrot.lane.b32.xlu1 %v1923_v22, %s1838_s9  ;;  %v1117_v29 = vld [vmem:[#allocation2 + $0x440] sm:$0xff]  ;;  %v1118_v58 = vld [vmem:[#allocation2 + $0x448] sm:$0xff] }
 0x243   :  { %1419 = vrot.lane.b32.xlu0 %v1915_v18, %s1839_s10 }
 0x244   :  { %v1047_v15 = vadd.f32 %v1043_v6, %v1021_v16  ;;  %v1048_v26 = vadd.f32 %v1044_v40, %v1022_v35  ;;  %v1032_v12 = vpop.permute.xlu1 %1031  ;;  %v1493_v16 = vld [vmem:[%s3137_s4] sm:$0xff] }
 0x245   :  { %v1056_v32 = vpop.permute.xlu0 %1055  ;;  %v1034_v39 = vsel %vm1033_vm0, %v1030_v19, %v1032_v12  ;;  %v1037_v38 = vsel %vm1033_vm0, %v1032_v12, %v1026_v7  ;;  %vm1449_vm0 = vcmp.lt.s32.totalorder %v2160_v23, 78 }
 0x246   :  { %v1045_v9 = vmul.f32 %v1041_v2, %v1034_v39  ;;  %v1046_v37 = vmul.f32 %v1042_v30, %v1037_v38  ;;  %1417 = vrot.lane.b32.xlu1 %v1919_v20, %s1839_s10  ;;  %v1120_v2 = vld [vmem:[#allocation2 + $0x458] sm:$0xff]  ;;  %v1508_v30 = vld [vmem:[%s3139_s6] sm:$0xff] }
 0x247   :  { %1441 = vrot.lane.b32.xlu0 %v1913_v17, %s1840_s11 }
 0x248   :  { %v1049_v57 = vadd.f32 %v1045_v9, %v1023_v60  ;;  %v1050_v27 = vadd.f32 %v1046_v37, %v1024_v13  ;;  %v1054_v0 = vpop.permute.xlu1 %1053 }
 0x249   :  { %v1078_v42 = vpop.permute.xlu0 %1077  ;;  %v1061_v43 = vsel %vm1059_vm1, %v1054_v0, %v1056_v32  ;;  %v1062_v31 = vsel %vm1059_vm1, %v1052_v1, %v1054_v0 }
 0x24a   :  { %v1069_v25 = vmul.f32 %v1065_v34, %v1062_v31  ;;  %v1070_v3 = vmul.f32 %v1066_v51, %v1061_v43  ;;  %1421 = vrot.lane.b32.xlu1 %v1923_v22, %s1839_s10  ;;  %v1144_v34 = vld [vmem:[#allocation2 + $0x468] sm:$0xff] }
 0x24b   :  { %1445 = vrot.lane.b32.xlu0 %v1915_v18, %s1840_s11 }
 0x24c   :  { %v1073_v50 = vadd.f32 %v1069_v25, %v1047_v15  ;;  %v1074_v52 = vadd.f32 %v1070_v3, %v1048_v26  ;;  %v1058_v49 = vpop.permute.xlu1 %1057  ;;  %v1145_v3 = vld [vmem:[#allocation2 + $0x470] sm:$0xff] }
 0x24d   :  { %v1082_v41 = vpop.permute.xlu0 %1081  ;;  %v1060_v5 = vsel %vm1059_vm1, %v1056_v32, %v1058_v49  ;;  %v1063_v53 = vsel %vm1059_vm1, %v1058_v49, %v1052_v1  ;;  %vm1475_vm1 = vcmp.lt.s32.totalorder %v2160_v23, 77  ;;  %v3229_v23 = vld [vmem:[#allocation11_spill] sm:$0xff] }
 0x24e   :  { %v1071_v44 = vmul.f32 %v1067_v28, %v1060_v5  ;;  %v1072_v59 = vmul.f32 %v1068_v54, %v1063_v53  ;;  %1443 = vrot.lane.b32.xlu1 %v1919_v20, %s1840_s11  ;;  %v1146_v28 = vld [vmem:[#allocation2 + $0x478] sm:$0xff] }
 0x24f   :  { %1467 = vrot.lane.b32.xlu0 %v1913_v17, %s1841_s3  ;;  %v1093_v17 = vld [vmem:[#allocation2 + $0x430] sm:$0xff] }
 0x250   :  { %v1075_v56 = vadd.f32 %v1071_v44, %v1049_v57  ;;  %v1076_v7 = vadd.f32 %v1072_v59, %v1050_v27  ;;  %v1080_v14 = vpop.permute.xlu1 %1079  ;;  %v1169_v59 = vld [vmem:[#allocation2 + $0x480] sm:$0xff] }
 0x251   :  { %v1104_v62 = vpop.permute.xlu0 %1103  ;;  %v1087_v45 = vsel %vm1085_vm2, %v1080_v14, %v1082_v41  ;;  %v1088_v47 = vsel %vm1085_vm2, %v1078_v42, %v1080_v14 }
 0x252   :  { %v1095_v61 = vmul.f32 %v1091_v24, %v1088_v47  ;;  %v1096_v4 = vmul.f32 %v1092_v36, %v1087_v45  ;;  %1447 = vrot.lane.b32.xlu1 %v1923_v22, %s1840_s11  ;;  %v1170_v24 = vld [vmem:[#allocation2 + $0x488] sm:$0xff] }
 0x253   :  { %1471 = vrot.lane.b32.xlu0 %v1915_v18, %s1841_s3 }
 0x254   :  { %v1099_v35 = vadd.f32 %v1095_v61, %v1073_v50  ;;  %v1100_v19 = vadd.f32 %v1096_v4, %v1074_v52  ;;  %v1084_v11 = vpop.permute.xlu1 %1083  ;;  %v1171_v4 = vld [vmem:[#allocation2 + $0x490] sm:$0xff] }
 0x255   :  { %v1108_v63 = vpop.permute.xlu0 %1107  ;;  %v1086_v55 = vsel %vm1085_vm2, %v1082_v41, %v1084_v11  ;;  %v1089_v21 = vsel %vm1085_vm2, %v1084_v11, %v1078_v42  ;;  %vm1514_vm2 = vcmask 64512  }
 0x256   :  { %v1097_v18 = vmul.f32 %v1093_v17, %v1086_v55  ;;  %v1098_v48 = vmul.f32 %v1094_v46, %v1089_v21  ;;  %1469 = vrot.lane.b32.xlu1 %v1919_v20, %s1841_s3  ;;  %v1119_v20 = vld [vmem:[#allocation2 + $0x450] sm:$0xff]  ;;  %v1172_v17 = vld [vmem:[#allocation2 + $0x498] sm:$0xff] }
 0x257   :  { %1496 = vperm.xlu0 %1742, %v1493_v16  }
 0x258   :  { %v1101_v60 = vadd.f32 %v1097_v18, %v1075_v56  ;;  %v1102_v13 = vadd.f32 %v1098_v48, %v1076_v7  ;;  %v1106_v8 = vpop.permute.xlu1 %1105  ;;  %v1195_v18 = vld [vmem:[#allocation2 + $0x4a0] sm:$0xff]  ;;  %v1196_v48 = vld [vmem:[#allocation2 + $0x4a8] sm:$0xff] }
 0x259   :  { %v1130_v1 = vpop.permute.xlu0 %1129  ;;  %v1113_v10 = vsel %vm1111_vm3, %v1106_v8, %v1108_v63  ;;  %v1114_v33 = vsel %vm1111_vm3, %v1104_v62, %v1106_v8 }
 0x25a   :  { %v1121_v6 = vmul.f32 %v1117_v29, %v1114_v33  ;;  %v1122_v40 = vmul.f32 %v1118_v58, %v1113_v10  ;;  %1473 = vrot.lane.b32.xlu1 %v1923_v22, %s1841_s3  ;;  %v1143_v22 = vld [vmem:[#allocation2 + $0x460] sm:$0xff] }
 0x25c   :  { %v1125_v15 = vadd.f32 %v1121_v6, %v1099_v35  ;;  %v1126_v26 = vadd.f32 %v1122_v40, %v1100_v19  ;;  %v1110_v12 = vpop.permute.xlu1 %1109  ;;  %v1197_v6 = vld [vmem:[#allocation2 + $0x4b0] sm:$0xff]  ;;  %v1198_v40 = vld [vmem:[#allocation2 + $0x4b8] sm:$0xff] }
 0x25d   :  { %v1134_v32 = vpop.permute.xlu0 %1133  ;;  %v1112_v39 = vsel %vm1111_vm3, %v1108_v63, %v1110_v12  ;;  %v1115_v38 = vsel %vm1111_vm3, %v1110_v12, %v1104_v62 }
 0x25e   :  { %v1123_v9 = vmul.f32 %v1119_v20, %v1112_v39  ;;  %v1124_v37 = vmul.f32 %v1120_v2, %v1115_v38  ;;  %1511 = vperm.xlu1 %1743, %v1508_v30   ;;  %v1221_v38 = vld [vmem:[#allocation2 + $0x4c0] sm:$0xff] }
 0x260   :  { %v1127_v51 = vadd.f32 %v1123_v9, %v1101_v60  ;;  %v1128_v57 = vadd.f32 %v1124_v37, %v1102_v13  ;;  %v1132_v42 = vpop.permute.xlu1 %1131  ;;  %v1222_v9 = vld [vmem:[#allocation2 + $0x4c8] sm:$0xff] }
 0x261   :  { %v1156_v27 = vpop.permute.xlu0 %1155  ;;  %v1139_v0 = vsel %vm1137_vm4, %v1132_v42, %v1134_v32  ;;  %v1140_v43 = vsel %vm1137_vm4, %v1130_v1, %v1132_v42 }
 0x262   :  { %v1147_v31 = vmul.f32 %v1143_v22, %v1140_v43  ;;  %v1148_v25 = vmul.f32 %v1144_v34, %v1139_v0  ;;  %v1224_v43 = vld [vmem:[#allocation2 + $0x4d8] sm:$0xff] }
 0x264   :  { %v1151_v54 = vadd.f32 %v1147_v31, %v1125_v15  ;;  %v1152_v50 = vadd.f32 %v1148_v25, %v1126_v26  ;;  %v1136_v41 = vpop.permute.xlu1 %1135 }
 0x265   :  { %v1160_v52 = vpop.permute.xlu0 %1159  ;;  %v1138_v49 = vsel %vm1137_vm4, %v1134_v32, %v1136_v41  ;;  %v1141_v5 = vsel %vm1137_vm4, %v1136_v41, %v1130_v1 }
 0x266   :  { %v1149_v53 = vmul.f32 %v1145_v3, %v1138_v49  ;;  %v1150_v44 = vmul.f32 %v1146_v28, %v1141_v5 }
 0x268   :  { %v1153_v36 = vadd.f32 %v1149_v53, %v1127_v51  ;;  %v1154_v56 = vadd.f32 %v1150_v44, %v1128_v57  ;;  %v1158_v62 = vpop.permute.xlu1 %1157 }
 0x269   :  { %v1182_v7 = vpop.permute.xlu0 %1181  ;;  %v1165_v14 = vsel %vm1163_vm5, %v1158_v62, %v1160_v52  ;;  %v1166_v45 = vsel %vm1163_vm5, %v1156_v27, %v1158_v62 }
 0x26a   :  { %v1173_v47 = vmul.f32 %v1169_v59, %v1166_v45  ;;  %v1174_v61 = vmul.f32 %v1170_v24, %v1165_v14 }
 0x26c   :  { %v1177_v46 = vadd.f32 %v1173_v47, %v1151_v54  ;;  %v1178_v16 = vadd.f32 %v1174_v61, %v1152_v50  ;;  %v1162_v19 = vpop.permute.xlu1 %1161 }
 0x26d   :  { %v1186_v35 = vpop.permute.xlu0 %1185  ;;  %v1164_v63 = vsel %vm1163_vm5, %v1160_v52, %v1162_v19  ;;  %v1167_v11 = vsel %vm1163_vm5, %v1162_v19, %v1156_v27 }
 0x26e   :  { %v1175_v55 = vmul.f32 %v1171_v4, %v1164_v63  ;;  %v1176_v21 = vmul.f32 %v1172_v17, %v1167_v11  ;;  %v1223_v11 = vld [vmem:[#allocation2 + $0x4d0] sm:$0xff] }
 0x270   :  { %v1179_v29 = vadd.f32 %v1175_v55, %v1153_v36  ;;  %v1180_v58 = vadd.f32 %v1176_v21, %v1154_v56  ;;  %v1184_v13 = vpop.permute.xlu1 %1183 }
 0x271   :  { %v1208_v60 = vpop.permute.xlu0 %1207  ;;  %v1191_v1 = vsel %vm1189_vm6, %v1184_v13, %v1186_v35  ;;  %v1192_v8 = vsel %vm1189_vm6, %v1182_v7, %v1184_v13 }
 0x272   :  { %v1199_v10 = vmul.f32 %v1195_v18, %v1192_v8  ;;  %v1200_v33 = vmul.f32 %v1196_v48, %v1191_v1  ;;  %v1247_v48 = vld [vmem:[#allocation2 + $0x4e0] sm:$0xff]  ;;  %v1249_v1 = vld [vmem:[#allocation2 + $0x4f0] sm:$0xff]  ;;  %v1250_v8 = vld [vmem:[#allocation2 + $0x4f8] sm:$0xff] }
 0x274   :  { %v1203_v20 = vadd.f32 %v1199_v10, %v1177_v46  ;;  %v1204_v2 = vadd.f32 %v1200_v33, %v1178_v16  ;;  %v1188_v15 = vpop.permute.xlu1 %1187 }
 0x275   :  { %v1212_v30 = vpop.permute.xlu0 %1211  ;;  %v1190_v26 = vsel %vm1189_vm6, %v1186_v35, %v1188_v15  ;;  %v1193_v32 = vsel %vm1189_vm6, %v1188_v15, %v1182_v7 }
 0x276   :  { %v1201_v12 = vmul.f32 %v1197_v6, %v1190_v26  ;;  %v1202_v39 = vmul.f32 %v1198_v40, %v1193_v32 }
 0x278   :  { %v2925_v37 = vadd.f32 %v1201_v12, %v1179_v29  ;;  %v1206_v22 = vadd.f32 %v1202_v39, %v1180_v58  ;;  %v1210_v51 = vpop.permute.xlu1 %1209  ;;  %v1248_v29 = vld [vmem:[#allocation2 + $0x4e8] sm:$0xff] }
 0x279   :  { %v1234_v34 = vpop.permute.xlu0 %1233  ;;  %v1217_v57 = vsel %vm1215_vm7, %v1210_v51, %v1212_v30  ;;  %v1218_v27 = vsel %vm1215_vm7, %v1208_v60, %v1210_v51 }
 0x27a   :  { %v1225_v42 = vmul.f32 %v1221_v38, %v1218_v27  ;;  %v1226_v0 = vmul.f32 %v1222_v9, %v1217_v57  ;;  %v1275_v38 = vld [vmem:[#allocation2 + $0x510] sm:$0xff]  ;;  %v1276_v9 = vld [vmem:[#allocation2 + $0x518] sm:$0xff]  ;;  %v1299_v27 = vld [vmem:[#allocation2 + $0x520] sm:$0xff] }
 0x27c   :  { %v2931_v31 = vadd.f32 %v1225_v42, %v1203_v20  ;;  %v2933_v25 = vadd.f32 %v1226_v0, %v1204_v2  ;;  %v1214_v28 = vpop.permute.xlu1 %1213  ;;  %v1273_v20 = vld [vmem:[#allocation2 + $0x500] sm:$0xff]  ;;  %v1274_v2 = vld [vmem:[#allocation2 + $0x508] sm:$0xff] }
 0x27d   :  { %v1238_v3 = vpop.permute.xlu0 %1237  ;;  %v1219_v54 = vsel %vm1215_vm7, %v1214_v28, %v1208_v60  ;;  %v1216_v55 = vsel %vm1215_vm7, %v1212_v30, %v1214_v28  ;;  %v1300_v42 = vld [vmem:[#allocation2 + $0x528] sm:$0xff] }
 0x27e   :  { %v1228_v50 = vmul.f32 %v1224_v43, %v1219_v54  ;;  %v1227_v13 = vmul.f32 %v1223_v11, %v1216_v55  ;;  %v1326_v11 = vld [vmem:[#allocation2 + $0x548] sm:$0xff] }
 0x280   :  { %v2937_v52 = vadd.f32 %v1228_v50, %v1206_v22  ;;  %v1236_v49 = vpop.permute.xlu1 %1235 }
 0x281   :  { %v1260_v41 = vpop.permute.xlu0 %1259  ;;  %v1243_v58 = vsel %vm1241_vm8, %v1236_v49, %v1238_v3  ;;  %v1244_v60 = vsel %vm1241_vm8, %v1234_v34, %v1236_v49 }
 0x282   :  { %v1251_v6 = vmul.f32 %v1247_v48, %v1244_v60  ;;  %v1252_v40 = vmul.f32 %v1248_v29, %v1243_v58 }
 0x284   :  { %v1240_v53 = vpop.permute.xlu1 %1239  ;;  %v1255_v28 = vadd.f32 %v1251_v6, %v2931_v31  ;;  %v1256_v54 = vadd.f32 %v1252_v40, %v2933_v25  ;;  %v1351_v40 = vld [vmem:[#allocation2 + $0x560] sm:$0xff] }
 0x285   :  { %v1264_v5 = vpop.permute.xlu0 %1263  ;;  %v1242_v10 = vsel %vm1241_vm8, %v1238_v3, %v1240_v53  ;;  %v1245_v33 = vsel %vm1241_vm8, %v1240_v53, %v1234_v34  ;;  %v1231_v3 = vadd.f32 %v1227_v13, %v2925_v37  ;;  %v1301_v53 = vld [vmem:[#allocation2 + $0x530] sm:$0xff] }
 0x286   :  { %v1253_v12 = vmul.f32 %v1249_v1, %v1242_v10  ;;  %v1254_v39 = vmul.f32 %v1250_v8, %v1245_v33  ;;  %v1327_v13 = vld [vmem:[#allocation2 + $0x550] sm:$0xff]  ;;  %v1328_v1 = vld [vmem:[#allocation2 + $0x558] sm:$0xff] }
 0x288   :  { %v1262_v59 = vpop.permute.xlu1 %1261  ;;  %v1258_v29 = vadd.f32 %v1254_v39, %v2937_v52 }
 0x289   :  { %v2939_v44 = vpop.permute.xlu0 %1285  ;;  %v1269_v30 = vsel %vm1267_vm9, %v1262_v59, %v1264_v5  ;;  %v1270_v15 = vsel %vm1267_vm9, %v1260_v41, %v1262_v59  ;;  %v1302_v59 = vld [vmem:[#allocation2 + $0x538] sm:$0xff] }
 0x28a   :  { %v1277_v51 = vmul.f32 %v1273_v20, %v1270_v15  ;;  %v1278_v57 = vmul.f32 %v1274_v2, %v1269_v30  ;;  %v1352_v20 = vld [vmem:[#allocation2 + $0x568] sm:$0xff] }
 0x28c   :  { %v1266_v36 = vpop.permute.xlu1 %1265 }
 0x28d   :  { %v2941_v24 = vpop.permute.xlu0 %1289  ;;  %v1268_v22 = vsel %vm1267_vm9, %v1264_v5, %v1266_v36  ;;  %v1271_v34 = vsel %vm1267_vm9, %v1266_v36, %v1260_v41 }
 0x28e   :  { %v1279_v49 = vmul.f32 %v1275_v38, %v1268_v22  ;;  %v1280_v5 = vmul.f32 %v1276_v9, %v1271_v34  ;;  %v1353_v38 = vld [vmem:[#allocation2 + $0x570] sm:$0xff]  ;;  %v1354_v9 = vld [vmem:[#allocation2 + $0x578] sm:$0xff] }
 0x290   :  { %v1288_v7 = vpop.permute.xlu1 %1287 }
 0x291   :  { %v2943_v56 = vpop.permute.xlu0 %1311  ;;  %v1295_v0 = vsel %vm1293_vm10, %v1288_v7, %v2941_v24  ;;  %v1296_v43 = vsel %vm1293_vm10, %v2939_v44, %v1288_v7  ;;  %v1325_v7 = vld [vmem:[#allocation2 + $0x540] sm:$0xff] }
 0x292   :  { %v1303_v31 = vmul.f32 %v1299_v27, %v1296_v43  ;;  %v1304_v25 = vmul.f32 %v1300_v42, %v1295_v0  ;;  %v1378_v27 = vld [vmem:[#allocation2 + $0x588] sm:$0xff] }
 0x294   :  { %v1292_v14 = vpop.permute.xlu1 %1291 }
 0x295   :  { %v2945_v62 = vpop.permute.xlu0 %1315  ;;  %v1294_v36 = vsel %vm1293_vm10, %v2941_v24, %v1292_v14  ;;  %v1297_v37 = vsel %vm1293_vm10, %v1292_v14, %v2939_v44  ;;  %v1257_v24 = vadd.f32 %v1253_v12, %v1231_v3  ;;  %v1281_v44 = vadd.f32 %v1277_v51, %v1255_v28 }
 0x296   :  { %v1282_v14 = vadd.f32 %v1278_v57, %v1256_v54  ;;  %v1305_v58 = vmul.f32 %v1301_v53, %v1294_v36  ;;  %v1306_v60 = vmul.f32 %v1302_v59, %v1297_v37  ;;  %v1377_v57 = vld [vmem:[#allocation2 + $0x580] sm:$0xff]  ;;  %v1380_v53 = vld [vmem:[#allocation2 + $0x598] sm:$0xff] }
 0x297   :  { %v1283_v30 = vadd.f32 %v1279_v49, %v1257_v24 }
 0x298   :  { %v2949_v47 = vpop.permute.xlu1 %1313  ;;  %v1308_v15 = vadd.f32 %v1304_v25, %v1282_v14 }
 0x299   :  { %v2947_v45 = vpop.permute.xlu0 %1337  ;;  %v1321_v55 = vsel %vm1319_vm11, %v2949_v47, %v2945_v62  ;;  %v1322_v48 = vsel %vm1319_vm11, %v2943_v56, %v2949_v47  ;;  %v1309_v3 = vadd.f32 %v1305_v58, %v1283_v30 }
 0x29a   :  { %v1329_v52 = vmul.f32 %v1325_v7, %v1322_v48  ;;  %v1330_v6 = vmul.f32 %v1326_v11, %v1321_v55 }
 0x29c   :  { %v2953_v4 = vpop.permute.xlu1 %1317 }
 0x29d   :  { %v2951_v61 = vpop.permute.xlu0 %1341  ;;  %v1320_v8 = vsel %vm1319_vm11, %v2945_v62, %v2953_v4  ;;  %v1323_v47 = vsel %vm1319_vm11, %v2953_v4, %v2943_v56  ;;  %v1284_v56 = vadd.f32 %v1280_v5, %v1258_v29  ;;  %v1307_v4 = vadd.f32 %v1303_v31, %v1281_v44  ;;  %v1379_v5 = vld [vmem:[#allocation2 + $0x590] sm:$0xff]  ;;  %v1403_v29 = vld [vmem:[#allocation2 + $0x5a0] sm:$0xff]  ;;  %v1404_v44 = vld [vmem:[#allocation2 + $0x5a8] sm:$0xff] }
 0x29e   :  { %v1331_v12 = vmul.f32 %v1327_v13, %v1320_v8  ;;  %v1332_v39 = vmul.f32 %v1328_v1, %v1323_v47  ;;  %v1405_v1 = vld [vmem:[#allocation2 + $0x5b0] sm:$0xff]  ;;  %v1406_v8 = vld [vmem:[#allocation2 + $0x5b8] sm:$0xff] }
 0x29f   :  { %v1310_v28 = vadd.f32 %v1306_v60, %v1284_v56  ;;  %v1333_v54 = vadd.f32 %v1329_v52, %v1307_v4  ;;  %v1431_v4 = vld [vmem:[#allocation2 + $0x5d0] sm:$0xff] }
 0x2a0   :  { %v2957_v46 = vpop.permute.xlu1 %1339  ;;  %v1335_v31 = vadd.f32 %v1331_v12, %v1309_v3 }
 0x2a1   :  { %v2955_v17 = vpop.permute.xlu0 %1363  ;;  %v1347_v2 = vsel %vm1345_vm12, %v2957_v46, %v2951_v61  ;;  %v1348_v62 = vsel %vm1345_vm12, %v2947_v45, %v2957_v46  ;;  %v1336_v25 = vadd.f32 %v1332_v39, %v1310_v28 }
 0x2a2   :  { %v1355_v51 = vmul.f32 %v1351_v40, %v1348_v62  ;;  %v1356_v46 = vmul.f32 %v1352_v20, %v1347_v2  ;;  %v1429_v40 = vld [vmem:[#allocation2 + $0x5c0] sm:$0xff]  ;;  %v1430_v20 = vld [vmem:[#allocation2 + $0x5c8] sm:$0xff] }
 0x2a4   :  { %v2961_v35 = vpop.permute.xlu1 %1343  ;;  %v1359_v7 = vadd.f32 %v1355_v51, %v1333_v54 }
 0x2a5   :  { %v2959_v16 = vpop.permute.xlu0 %1367  ;;  %v1346_v22 = vsel %vm1345_vm12, %v2951_v61, %v2961_v35  ;;  %v1349_v34 = vsel %vm1345_vm12, %v2961_v35, %v2947_v45  ;;  %v1334_v45 = vadd.f32 %v1330_v6, %v1308_v15  ;;  %v1432_v15 = vld [vmem:[#allocation2 + $0x5d8] sm:$0xff] }
 0x2a6   :  { %v1357_v35 = vmul.f32 %v1353_v38, %v1346_v22  ;;  %v1358_v49 = vmul.f32 %v1354_v9, %v1349_v34  ;;  %v1455_v38 = vld [vmem:[#allocation2 + $0x5e0] sm:$0xff]  ;;  %v1456_v9 = vld [vmem:[#allocation2 + $0x5e8] sm:$0xff] }
 0x2a7   :  { %v1360_v11 = vadd.f32 %v1356_v46, %v1334_v45  ;;  %v1457_v46 = vld [vmem:[#allocation2 + $0x5f0] sm:$0xff] }
 0x2a8   :  { %v2965_v63 = vpop.permute.xlu1 %1365  ;;  %v1362_v14 = vadd.f32 %v1358_v49, %v1336_v25  ;;  %v1482_v49 = vld [vmem:[#allocation2 + $0x608] sm:$0xff]  ;;  %v1484_v25 = vld [vmem:[#allocation2 + $0x618] sm:$0xff] }
 0x2a9   :  { %v2963_v19 = vpop.permute.xlu0 %1389  ;;  %v1373_v42 = vsel %vm1371_vm13, %v2965_v63, %v2959_v16  ;;  %v1374_v0 = vsel %vm1371_vm13, %v2955_v17, %v2965_v63 }
 0x2aa   :  { %v1381_v36 = vmul.f32 %v1377_v57, %v1374_v0  ;;  %v1382_v37 = vmul.f32 %v1378_v27, %v1373_v42  ;;  %v1458_v57 = vld [vmem:[#allocation2 + $0x5f8] sm:$0xff] }
 0x2ac   :  { %v2972_v18 = vpop.permute.xlu1 %1369  ;;  %v1385_v60 = vadd.f32 %v1381_v36, %v1359_v7  ;;  %v1386_v13 = vadd.f32 %v1382_v37, %v1360_v11 }
 0x2ad   :  { %v2970_v21 = vpop.permute.xlu0 %1393  ;;  %v1372_v59 = vsel %vm1371_vm13, %v2959_v16, %v2972_v18  ;;  %v1375_v63 = vsel %vm1371_vm13, %v2972_v18, %v2955_v17  ;;  %v1361_v18 = vadd.f32 %v1357_v35, %v1335_v31  ;;  %v1481_v35 = vld [vmem:[#allocation2 + $0x600] sm:$0xff]  ;;  %v1483_v31 = vld [vmem:[#allocation2 + $0x610] sm:$0xff] }
 0x2ae   :  { %v1383_v48 = vmul.f32 %v1379_v5, %v1372_v59  ;;  %v1384_v24 = vmul.f32 %v1380_v53, %v1375_v63 }
 0x2b0   :  { %v2982_v32 = vpop.permute.xlu1 %1391  ;;  %v1387_v30 = vadd.f32 %v1383_v48, %v1361_v18  ;;  %v1388_v56 = vadd.f32 %v1384_v24, %v1362_v14 }
 0x2b1   :  { %v2980_v26 = vpop.permute.xlu0 %1415  ;;  %v1399_v16 = vsel %vm1397_vm14, %v2982_v32, %v2970_v21  ;;  %v1400_v17 = vsel %vm1397_vm14, %v2963_v19, %v2982_v32 }
 0x2b2   :  { %v1407_v52 = vmul.f32 %v1403_v29, %v1400_v17  ;;  %v1408_v6 = vmul.f32 %v1404_v44, %v1399_v16 }
 0x2b4   :  { %v3002_v41 = vpop.permute.xlu1 %1395  ;;  %v1411_v27 = vadd.f32 %v1407_v52, %v1385_v60  ;;  %v1412_v42 = vadd.f32 %v1408_v6, %v1386_v13  ;;  %v3225_v52 = vld [vmem:[#allocation12_spill] sm:$0xff] }
 0x2b5   :  { %v3000_v50 = vpop.permute.xlu0 %1419  ;;  %v1398_v47 = vsel %vm1397_vm14, %v2970_v21, %v3002_v41  ;;  %v1401_v32 = vsel %vm1397_vm14, %v3002_v41, %v2963_v19  ;;  %v3226_v6 = vld [vmem:[#allocation8_spill] sm:$0xff] }
 0x2b6   :  { %v1409_v12 = vmul.f32 %v1405_v1, %v1398_v47  ;;  %v1410_v39 = vmul.f32 %v1406_v8, %v1401_v32 }
 0x2b8   :  { %v3030_v33 = vpop.permute.xlu1 %1417  ;;  %v1413_v53 = vadd.f32 %v1409_v12, %v1387_v30  ;;  %v1414_v59 = vadd.f32 %v1410_v39, %v1388_v56 }
 0x2b9   :  { %v3028_v10 = vpop.permute.xlu0 %1441  ;;  %v1425_v2 = vsel %vm1423_vm15, %v3030_v33, %v3000_v50  ;;  %v1426_v62 = vsel %vm1423_vm15, %v2980_v26, %v3030_v33 }
 0x2ba   :  { %v1433_v34 = vmul.f32 %v1429_v40, %v1426_v62  ;;  %v1434_v51 = vmul.f32 %v1430_v20, %v1425_v2  ;;  %v144_v40 = vadd.f32 %v3226_v6, %v3225_v52  ;;  %v3227_v20 = vld [vmem:[#allocation9_spill] sm:$0xff]  ;;  %v3228_v62 = vld [vmem:[#allocation10_spill] sm:$0xff] }
 0x2bb   :  { %v221_v2 = vadd.f32 %v3227_v20, %v3225_v52 }
 0x2bc   :  { %v1422_v43 = vpop.permute.xlu1 %1421  ;;  %v1437_v36 = vadd.f32 %v1433_v34, %v1411_v27  ;;  %v1438_v37 = vadd.f32 %v1434_v51, %v1412_v42 }
 0x2bd   :  { %v1446_v61 = vpop.permute.xlu0 %1445  ;;  %v1424_v19 = vsel %vm1423_vm15, %v3000_v50, %v1422_v43  ;;  %v1427_v41 = vsel %vm1423_vm15, %v1422_v43, %v2980_v26 }
 0x2be   :  { %v1435_v0 = vmul.f32 %v1431_v4, %v1424_v19  ;;  %v1436_v43 = vmul.f32 %v1432_v15, %v1427_v41 }
 0x2c0   :  { %v1444_v55 = vpop.permute.xlu1 %1443  ;;  %v1439_v7 = vadd.f32 %v1435_v0, %v1413_v53  ;;  %v1440_v11 = vadd.f32 %v1436_v43, %v1414_v59 }
 0x2c1   :  { %v3073_v58 = vpop.permute.xlu0 %1467  ;;  %v1451_v33 = vsel %vm1449_vm0, %v1444_v55, %v1446_v61  ;;  %v1452_v22 = vsel %vm1449_vm0, %v3028_v10, %v1444_v55 }
 0x2c2   :  { %v1459_v54 = vmul.f32 %v1455_v38, %v1452_v22  ;;  %v1460_v45 = vmul.f32 %v1456_v9, %v1451_v33  ;;  %v1507_v9 = vld [vmem:[%s3138_s5] sm:$0xff]  ;;  %s1766_s5 = scalar_lea.vmem %s1671_s0, 512 }
 0x2c3   :  { %p1767_p5 = scmp.ne.s32.totalorder %s1671_s0, %s1766_s5  ;;  %p1772_p7 = scmp.lt.s32.totalorder %s1766_s5, %s1766_s5 }
 0x2c4   :  { %v1448_v21 = vpop.permute.xlu1 %1447  ;;  %v1463_v29 = vadd.f32 %v1459_v54, %v1437_v36  ;;  %v1464_v44 = vadd.f32 %v1460_v45, %v1438_v37 }
 0x2c5   :  { %v1450_v50 = vsel %vm1449_vm0, %v1446_v61, %v1448_v21  ;;  %v1453_v26 = vsel %vm1449_vm0, %v1448_v21, %v3028_v10  ;;  %v1472_v3 = vpop.permute.xlu0 %1471  ;;  %v146_v21 = vadd.f32 %v3228_v62, %v3225_v52  ;;  %p1773_p8 = por %p1772_p7, %p1771_p6 }
 0x2c6   :  { %v1461_v10 = vmul.f32 %v1457_v46, %v1450_v50  ;;  %v1462_v63 = vmul.f32 %v1458_v57, %v1453_v26 }
 0x2c7   :  { %p1774_p9 = pnand %p1773_p8, %p1767_p5 }
 0x2c8   :  { %v1470_v28 = vpop.permute.xlu1 %1469  ;;  %v1465_v18 = vadd.f32 %v1461_v10, %v1439_v7  ;;  %v1466_v14 = vadd.f32 %v1462_v63, %v1440_v11 }
 0x2c9   :  { %v1477_v5 = vsel %vm1475_vm1, %v1470_v28, %v1472_v3  ;;  %v1478_v61 = vsel %vm1475_vm1, %v3073_v58, %v1470_v28 }
 0x2ca   :  { %v1485_v55 = vmul.f32 %v1481_v35, %v1478_v61  ;;  %v1486_v48 = vmul.f32 %v1482_v49, %v1477_v5 }
 0x2cc   :  { %v1474_v24 = vpop.permute.xlu1 %1473  ;;  %v1489_v1 = vadd.f32 %v1485_v55, %v1463_v29  ;;  %v1490_v8 = vadd.f32 %v1486_v48, %v1464_v44 }
 0x2cd   :  { %v1476_v16 = vsel %vm1475_vm1, %v1472_v3, %v1474_v24  ;;  %v1479_v17 = vsel %vm1475_vm1, %v1474_v24, %v3073_v58  ;;  %v223_v58 = vadd.f32 %v3229_v23, %v3225_v52 }
 0x2ce   :  { %v1487_v60 = vmul.f32 %v1483_v31, %v1476_v16  ;;  %v1488_v13 = vmul.f32 %v1484_v25, %v1479_v17 }
 0x2d0   :  { %v1491_v47 = vadd.f32 %v1487_v60, %v1465_v18  ;;  %v1492_v32 = vadd.f32 %v1488_v13, %v1466_v14 }
 0x2d2   :  { %v1497_v30 = vpop.permute.xlu0 %1496 }
 0x2d3   :  { %v1499_v56 = vadd.f32 %v1497_v30, %v1489_v1  ;;  %v1500_v4 = vadd.f32 %v1497_v30, %v1490_v8  ;;  %v1501_v15 = vadd.f32 %v1497_v30, %v1491_v47  ;;  %v1502_v19 = vadd.f32 %v1497_v30, %v1492_v32 }
 0x2d5   :  { %v1503_v41 = vmul.f32 %v1499_v56, %v144_v40  ;;  %v1505_v12 = vmul.f32 %v1501_v15, %v221_v2  ;;  %v1504_v39 = vmul.f32 %v1500_v4, %v146_v21  ;;  %v1506_v38 = vmul.f32 %v1502_v19, %v223_v58 }
 0x2d7   :  { %1548 = vmatprep.subr.mxu0 %v1504_v39  ;;  %1619 = vmatprep.subr.mxu1 %v1506_v38 }
 0x2d8   :  { %1549 = vmatpush1.msra.mxu0 %v1503_v41  ;;  %1620 = vmatpush1.msra.mxu1 %v1505_v12 }
 0x2d9   :  { %1687 = vmatmul.mubr.msk.f32.vlgmr.msra.gmra.mxu0 %vm1514_vm2, %v1507_v9  ;;  %1688 = vmatmul.mubr.msk.f32.vlgmr.msra.gmra.mxu1 %vm1514_vm2, %v1507_v9  ;;  %v1512_v33 = vpop.permute.xlu1 %1511 }
 0x399   :  { %v1584_v22 = vpop.f32.mrf.mxu0  ;;  %v1655_v34 = vpop.f32.mrf.mxu1 }
 0x39a   :  { %v1585_v51 = vadd.f32 %v1584_v22, %v1512_v33  ;;  %v1656_v46 = vadd.f32 %v1655_v34, %v1512_v33 }
 0x39b   :  { %v1657_v57 = vpop.f32.mrf.mxu1  ;;  %v1586_v50 = vpop.f32.mrf.mxu0 }
 0x39c   :  { %v1658_v26 = vadd.f32 %v1657_v57, %v1512_v33  ;;  %1660 = vst [vmem:[#allocation5] sm:$0xff] %v1585_v51  ;;  %1662 = vst [vmem:[#allocation5 + $0x10] sm:$0xff] %v1656_v46  ;;  %v1587_v27 = vadd.f32 %v1586_v50, %v1512_v33 }
 0x39e   :  { %1663 = vst [vmem:[#allocation5 + $0x18] sm:$0xff] %v1658_v26  ;;  %1661 = vst [vmem:[#allocation5 + $0x8] sm:$0xff] %v1587_v27 }
 0x39f   :  { %1777 = shalt.err (!%p1774_p9)
}
 0x3a0   :  { %1673 = dma.vmem_to_hbm [thread:$0]  %s1671_s0, 512, %s3140_s7, [#allocation4]  }
 0x3a1   :  { %1788 = dma.done.wait [#allocation4], 512  }
 0x3a2   :  { %1789 = vsyncadd [#allocation4], 4294966784 }
 0x3a3   :  { %1677 = vsyncpa [#allocation3], 1 }
 0x3a4   :  { %1678 = vsyncpa [#allocation4], 1 }

</bundles_post_ra>
